<compile_context>
chip_gen: v6e
topology: v6e:2x2x1
jax: 0.10.0
libtpu: 0.0.40
codegen_flags: <defaults>
</compile_context>

<pallas_src>
import numpy as np
import jax
import jax.numpy as jnp
from jax.experimental import pallas as pl
from jax.experimental.pallas import tpu as pltpu

_BN_EPS = 1e-5


# ---------------------------------------------------------------------------
# Host-side packing helpers (run once, outside the kernel)
# ---------------------------------------------------------------------------
def _bilinear_matrix(n_in, n_out):
    """PyTorch F.interpolate(mode='bilinear', align_corners=False) as a matrix."""
    scale = n_in / n_out
    o = np.arange(n_out, dtype=np.float64)
    src = np.maximum((o + 0.5) * scale - 0.5, 0.0)
    i0 = np.minimum(np.floor(src).astype(np.int64), n_in - 1)
    lam = src - i0
    i1 = np.minimum(i0 + 1, n_in - 1)
    m = np.zeros((n_out, n_in), dtype=np.float64)
    m[np.arange(n_out), i0] += 1.0 - lam
    m[np.arange(n_out), i1] += lam
    return m.astype(np.float32)


def _pack_conv3x3(w_oihw, wid):
    """Fold a 3x3 / stride 1 / pad 1 conv into a (3*Cin*wid, Cout*wid) matrix.

    Activations use the (H, C*wid) layout (lane index = c*wid + w).  The
    column shift + zero padding is folded in via shifted identity blocks;
    the row shift is handled by the in-kernel im2col slab.
    """
    w = np.asarray(w_oihw, np.float32)
    cin = w.shape[1]
    cout = w.shape[0]
    shift = [np.eye(wid, k=1, dtype=np.float32),    # kw = 0  (offset -1)
             np.eye(wid, k=0, dtype=np.float32),    # kw = 1  (offset  0)
             np.eye(wid, k=-1, dtype=np.float32)]   # kw = 2  (offset +1)
    g = np.zeros((3 * cin * wid, cout * wid), np.float32)
    for kh in range(3):
        blk = np.zeros((cin * wid, cout * wid), np.float32)
        for kw in range(3):
            blk += np.kron(w[:, :, kh, kw].T, shift[kw])
        g[kh * cin * wid:(kh + 1) * cin * wid, :] = blk
    return g


def _aff_rows(scale, shift, wid):
    """Per-channel affine broadcast to the (c*wid + w) lane layout: (2, Cout*wid)."""
    s = np.repeat(np.asarray(scale, np.float32), wid)
    b = np.repeat(np.asarray(shift, np.float32), wid)
    return np.stack([s, b]).astype(np.float32)


# ---------------------------------------------------------------------------
# Parameters
# ---------------------------------------------------------------------------
def init_params(key, in_plane, upscale):
    num_up = 2 if upscale == 4 else 3        # mirrors `2 if upscale is 4 else 3`
    keys = jax.random.split(key, 3 + 5 * num_up)
    k = iter(keys)

    def nrm(shape, s):
        return s * jax.random.normal(next(k), shape, jnp.float32)

    p = {'num_up': num_up}
    p['head_w'] = nrm((in_plane, in_plane, 3, 3), 1.0 / np.sqrt(in_plane * 9))
    p['head_b'] = nrm((in_plane,), 0.1)
    p['body'] = []
    c_in = in_plane
    for i in range(num_up):
        c_out = int(in_plane / 2 ** (i + 1))
        w = nrm((c_out, c_in, 3, 3), 1.0 / np.sqrt(c_in * 9))
        gamma = 1.0 + nrm((c_out,), 0.1)
        beta = nrm((c_out,), 0.1)
        mean = nrm((c_out,), 0.1)
        var = jnp.abs(nrm((c_out,), 0.5)) + 0.5
        scale = gamma / jnp.sqrt(var + _BN_EPS)          # eval-mode BN fold
        shift = beta - mean * scale
        p['body'].append((w, scale, shift))
        c_in = c_out
    p['end_w'] = nrm((2, c_in, 3, 3), 1.0 / np.sqrt(c_in * 9))
    return p


def pack_params(params, height, width):
    """Pre-pack all weights / interpolation matrices for the fused kernel."""
    ops = []               # ('conv', G, aff, relu) | ('up', Mh, Rw)
    h, wid = height, width
    cin0 = params['head_w'].shape[1]

    hw = np.asarray(params['head_w'], np.float32)
    cout = hw.shape[0]
    ops.append(('conv', _pack_conv3x3(hw, wid),
                _aff_rows(np.ones((cout,), np.float32), params['head_b'], wid),
                False))
    c = cout
    for (bw, scale, shift) in params['body']:
        bw = np.asarray(bw, np.float32)
        cout = bw.shape[0]
        ops.append(('conv', _pack_conv3x3(bw, wid),
                    _aff_rows(scale, shift, wid), True))
        c = cout
        mh = _bilinear_matrix(h, 2 * h)                          # (2h, h)
        mwt = _bilinear_matrix(wid, 2 * wid).T                   # (wid, 2wid)
        rw = np.kron(np.eye(c, dtype=np.float32), mwt)           # (c*wid, c*2wid)
        ops.append(('up', mh.astype(np.float32), rw.astype(np.float32)))
        h, wid = 2 * h, 2 * wid

    ew = np.asarray(params['end_w'], np.float32)
    cout = ew.shape[0]
    ops.append(('conv', _pack_conv3x3(ew, wid),
                _aff_rows(np.ones((cout,), np.float32),
                          np.zeros((cout,), np.float32), wid),
                False))

    return {'ops': ops,
            'in_chw': (cin0, height, width),
            'out_chw': (cout, h, wid)}


# ---------------------------------------------------------------------------
# Fused Pallas forward
# ---------------------------------------------------------------------------
def make_forward(packed, batch):
    ops = packed['ops']
    cin, hin, win = packed['in_chw']
    cof, hf, wf = packed['out_chw']
    h0, cw0 = hin, cin * win
    cwf = cof * wf

    meta = []        # static per-op info
    arrays = []      # runtime operands (kernel argument order)
    max_h, max_k = h0, 0
    cur_h = h0
    for op in ops:
        if op[0] == 'conv':
            meta.append(('conv', op[3]))
            arrays += [jnp.asarray(op[1]), jnp.asarray(op[2])]
            max_k = max(max_k, op[1].shape[0])
        else:
            meta.append(('up',))
            arrays += [jnp.asarray(op[1]), jnp.asarray(op[2])]
            cur_h *= 2
            max_h = max(max_h, cur_h)
    n_par = len(arrays)

    def kernel(*refs):
        x_ref = refs[0]
        p_refs = refs[1:1 + n_par]
        o_ref = refs[1 + n_par]
        col_ref = refs[2 + n_par]          # (max_h + 2, max_k) VMEM scratch

        def conv_step(x, g_ref, a_ref, relu):
            hh, cw = x.shape
            kdim = 3 * cw
            zrow = jnp.zeros((1, cw), jnp.float32)
            # im2col slab: reading rows [1 : hh+1] yields, per block,
            #   [x[h-1] | x[h] | x[h+1]]  with zero rows at the halo.
            col_ref[2:hh + 2, 0:cw] = x                 # kh = 0  -> x[h-1]
            col_ref[1:2, 0:cw] = zrow
            col_ref[1:hh + 1, cw:2 * cw] = x            # kh = 1  -> x[h]
            col_ref[0:hh, 2 * cw:kdim] = x              # kh = 2  -> x[h+1]
            col_ref[hh:hh + 1, 2 * cw:kdim] = zrow
            col = col_ref[1:hh + 1, 0:kdim]             # (hh, 3*cw)
            y = jnp.dot(col, g_ref[...], preferred_element_type=jnp.float32)
            y = y * a_ref[0:1, :] + a_ref[1:2, :]       # folded bias / BN affine
            if relu:
                y = jnp.maximum(y, 0.0)
            return y                                    # (hh, cout*wid)

        x = x_ref[0].astype(jnp.float32)                # (h0, cin*win)
        pi = 0
        for m in meta:
            if m[0] == 'conv':
                x = conv_step(x, p_refs[pi], p_refs[pi + 1], m[1])
            else:                                       # bilinear 2x upsample
                mh_ref, rw_ref = p_refs[pi], p_refs[pi + 1]
                x = jnp.dot(mh_ref[...], x, preferred_element_type=jnp.float32)
                x = jnp.dot(x, rw_ref[...], preferred_element_type=jnp.float32)
            pi += 2
        o_ref[0] = x.astype(o_ref.dtype)

    def const_map(ndim):
        return lambda n: (0,) * ndim

    in_specs = [pl.BlockSpec((1, h0, cw0), lambda n: (n, 0, 0))]
    in_specs += [pl.BlockSpec(a.shape, const_map(a.ndim)) for a in arrays]
    out_spec = pl.BlockSpec((1, hf, cwf), lambda n: (n, 0, 0))

    fused = pl.pallas_call(
        kernel,
        grid=(batch,),
        in_specs=in_specs,
        out_specs=out_spec,
        out_shape=jax.ShapeDtypeStruct((batch, hf, cwf), jnp.float32),
        scratch_shapes=[pltpu.VMEM((max_h + 2, max_k), jnp.float32)],
        compiler_params=pltpu.CompilerParams(
            dimension_semantics=("parallel",)),
    )

    @jax.jit
    def forward(x_nchw):
        # NCHW -> (N, H, C*W) lane layout (tiny input, fused under jit)
        x2d = jnp.transpose(x_nchw.astype(jnp.float32), (0, 2, 1, 3))
        x2d = x2d.reshape(batch, hin, cin * win)
        y2d = fused(x2d, *arrays)
        y = y2d.reshape(batch, hf, cof, wf)
        return jnp.transpose(y, (0, 2, 1, 3))           # -> NCHW

    return forward


# ---------------------------------------------------------------------------
# Pure-JAX reference (correctness check only)
# ---------------------------------------------------------------------------
def basic_irnet_reference(x_nchw, params):
    def conv(x, w, scale, shift, relu):
        y = jax.lax.conv_general_dilated(
            x, w, window_strides=(1, 1), padding=((1, 1), (1, 1)),
            dimension_numbers=('NCHW', 'OIHW', 'NCHW'))
        y = y * scale[None, :, None, None] + shift[None, :, None, None]
        return jnp.maximum(y, 0.0) if relu else y

    def up(x):
        _, _, h, w = x.shape
        mh = jnp.asarray(_bilinear_matrix(h, 2 * h))
        mw = jnp.asarray(_bilinear_matrix(w, 2 * w))
        y = jnp.einsum('oh,nchw->ncow', mh, x)
        y = jnp.einsum('pw,nchw->nchp', mw, y)
        return y

    x = x_nchw.astype(jnp.float32)
    c = params['head_w'].shape[0]
    x = conv(x, params['head_w'], jnp.ones((c,), jnp.float32), params['head_b'], False)
    for (w, scale, shift) in params['body']:
        x = up(conv(x, w, scale, shift, True))
    c = params['end_w'].shape[0]
    x = conv(x, params['end_w'], jnp.ones((c,), jnp.float32),
             jnp.zeros((c,), jnp.float32), False)
    return x


if __name__ == "__main__":
    in_plane, upscale = 8, 4            # upscale == 4 -> num_upsample = 2
    N, H, W = 2, 16, 16

    key = jax.random.PRNGKey(0)
    pkey, xkey = jax.random.split(key)
    params = init_params(pkey, in_plane, upscale)
    packed = pack_params(params, H, W)
    forward = make_forward(packed, N)

    x = jax.random.normal(xkey, (N, in_plane, H, W), jnp.float32)   # NCHW like PyTorch
    out = jax.block_until_ready(forward(x))

    expected_hw = H * 2 ** params['num_up']
    assert out.shape == (N, 2, expected_hw, expected_hw), out.shape

    ref = jax.block_until_ready(basic_irnet_reference(x, params))
    np.testing.assert_allclose(np.asarray(out), np.asarray(ref), rtol=2e-2, atol=2e-2)

    print("KERNEL_OK")
</pallas_src>

<mosaic_0001>
module attributes {stable_mosaic.version = 11 : i64} {
  func.func @kernel(%arg0: i32, %arg1: memref<1x16x128xf32, #tpu.memory_space<vmem>>, %arg2: memref<384x128xf32, #tpu.memory_space<vmem>>, %arg3: memref<2x128xf32, #tpu.memory_space<vmem>>, %arg4: memref<384x64xf32, #tpu.memory_space<vmem>>, %arg5: memref<2x64xf32, #tpu.memory_space<vmem>>, %arg6: memref<32x16xf32, #tpu.memory_space<vmem>>, %arg7: memref<64x128xf32, #tpu.memory_space<vmem>>, %arg8: memref<384x64xf32, #tpu.memory_space<vmem>>, %arg9: memref<2x64xf32, #tpu.memory_space<vmem>>, %arg10: memref<64x32xf32, #tpu.memory_space<vmem>>, %arg11: memref<64x128xf32, #tpu.memory_space<vmem>>, %arg12: memref<384x128xf32, #tpu.memory_space<vmem>>, %arg13: memref<2x128xf32, #tpu.memory_space<vmem>>, %arg14: memref<1x64x128xf32, #tpu.memory_space<vmem>>, %arg15: memref<66x384xf32, #tpu.memory_space<vmem>>) attributes {dimension_semantics = [#tpu.dimension_semantics<parallel>], iteration_bounds = array<i64: 2>, scalar_prefetch = 0 : i64, scratch_operands = 1 : i64, tpu.core_type = #tpu.core_type<tc>, window_params = [{transform_indices = @transform_0, window_bounds = array<i64: 1, 16, 128>}, {pipeline_mode = #tpu.pipeline_mode<synchronous>, transform_indices = @transform_1, window_bounds = array<i64: 384, 128>}, {pipeline_mode = #tpu.pipeline_mode<synchronous>, transform_indices = @transform_2, window_bounds = array<i64: 2, 128>}, {pipeline_mode = #tpu.pipeline_mode<synchronous>, transform_indices = @transform_3, window_bounds = array<i64: 384, 64>}, {pipeline_mode = #tpu.pipeline_mode<synchronous>, transform_indices = @transform_4, window_bounds = array<i64: 2, 64>}, {pipeline_mode = #tpu.pipeline_mode<synchronous>, transform_indices = @transform_5, window_bounds = array<i64: 32, 16>}, {pipeline_mode = #tpu.pipeline_mode<synchronous>, transform_indices = @transform_6, window_bounds = array<i64: 64, 128>}, {pipeline_mode = #tpu.pipeline_mode<synchronous>, transform_indices = @transform_7, window_bounds = array<i64: 384, 64>}, {pipeline_mode = #tpu.pipeline_mode<synchronous>, transform_indices = @transform_8, window_bounds = array<i64: 2, 64>}, {pipeline_mode = #tpu.pipeline_mode<synchronous>, transform_indices = @transform_9, window_bounds = array<i64: 64, 32>}, {pipeline_mode = #tpu.pipeline_mode<synchronous>, transform_indices = @transform_10, window_bounds = array<i64: 64, 128>}, {pipeline_mode = #tpu.pipeline_mode<synchronous>, transform_indices = @transform_11, window_bounds = array<i64: 384, 128>}, {pipeline_mode = #tpu.pipeline_mode<synchronous>, transform_indices = @transform_12, window_bounds = array<i64: 2, 128>}, {transform_indices = @transform_13, window_bounds = array<i64: 1, 64, 128>}]} {
    %c0 = arith.constant 0 : index
    %c0_0 = arith.constant 0 : index
    %c0_1 = arith.constant 0 : index
    %0 = vector.load %arg1[%c0, %c0_0, %c0_1] : memref<1x16x128xf32, #tpu.memory_space<vmem>>, vector<1x16x128xf32>
    %1 = vector.shape_cast %0 : vector<1x16x128xf32> to vector<16x128xf32>
    %cst = arith.constant 0.000000e+00 : f32
    %2 = vector.broadcast %cst : f32 to vector<1x128xf32>
    %c2 = arith.constant 2 : index
    %c0_2 = arith.constant 0 : index
    %3 = vector.load %arg15[%c2, %c0_2] : memref<66x384xf32, #tpu.memory_space<vmem>>, vector<16x128xf32>
    tpu.vector_store %arg15[%c2, %c0_2], %1 {strides = array<i32>} : memref<66x384xf32, #tpu.memory_space<vmem>>, vector<16x128xf32>,
    %c1 = arith.constant 1 : index
    %c0_3 = arith.constant 0 : index
    %4 = vector.load %arg15[%c1, %c0_3] : memref<66x384xf32, #tpu.memory_space<vmem>>, vector<1x128xf32>
    tpu.vector_store %arg15[%c1, %c0_3], %2 {strides = array<i32>} : memref<66x384xf32, #tpu.memory_space<vmem>>, vector<1x128xf32>,
    %c1_4 = arith.constant 1 : index
    %c128 = arith.constant 128 : index
    %5 = vector.load %arg15[%c1_4, %c128] : memref<66x384xf32, #tpu.memory_space<vmem>>, vector<16x128xf32>
    tpu.vector_store %arg15[%c1_4, %c128], %1 {strides = array<i32>} : memref<66x384xf32, #tpu.memory_space<vmem>>, vector<16x128xf32>,
    %c0_5 = arith.constant 0 : index
    %c256 = arith.constant 256 : index
    %6 = vector.load %arg15[%c0_5, %c256] : memref<66x384xf32, #tpu.memory_space<vmem>>, vector<16x128xf32>
    tpu.vector_store %arg15[%c0_5, %c256], %1 {strides = array<i32>} : memref<66x384xf32, #tpu.memory_space<vmem>>, vector<16x128xf32>,
    %c16 = arith.constant 16 : index
    %c256_6 = arith.constant 256 : index
    %7 = vector.load %arg15[%c16, %c256_6] : memref<66x384xf32, #tpu.memory_space<vmem>>, vector<1x128xf32>
    tpu.vector_store %arg15[%c16, %c256_6], %2 {strides = array<i32>} : memref<66x384xf32, #tpu.memory_space<vmem>>, vector<1x128xf32>,
    %c1_7 = arith.constant 1 : index
    %c0_8 = arith.constant 0 : index
    %8 = vector.load %arg15[%c1_7, %c0_8] : memref<66x384xf32, #tpu.memory_space<vmem>>, vector<16x384xf32>
    %c0_9 = arith.constant 0 : index
    %c0_10 = arith.constant 0 : index
    %9 = vector.load %arg2[%c0_9, %c0_10] : memref<384x128xf32, #tpu.memory_space<vmem>>, vector<384x128xf32>
    %cst_11 = arith.constant dense<0.000000e+00> : vector<16x128xf32>
    %10 = tpu.matmul %8, %9, %cst_11 {dimension_numbers = #tpu.dot_dimension_numbers<[1], [0], [0], [1], [0, 0, 1, 1], [], []>} : vector<16x384xf32>, vector<384x128xf32>, vector<16x128xf32> -> vector<16x128xf32>
    %c0_12 = arith.constant 0 : index
    %c0_13 = arith.constant 0 : index
    %11 = vector.load %arg3[%c0_12, %c0_13] : memref<2x128xf32, #tpu.memory_space<vmem>>, vector<1x128xf32>
    %12 = vector.broadcast %11 : vector<1x128xf32> to vector<16x128xf32>
    %13 = arith.mulf %10, %12 : vector<16x128xf32>
    %c1_14 = arith.constant 1 : index
    %c0_15 = arith.constant 0 : index
    %14 = vector.load %arg3[%c1_14, %c0_15] : memref<2x128xf32, #tpu.memory_space<vmem>>, vector<1x128xf32>
    %15 = vector.broadcast %14 : vector<1x128xf32> to vector<16x128xf32>
    %16 = arith.addf %13, %15 : vector<16x128xf32>
    %cst_16 = arith.constant 0.000000e+00 : f32
    %17 = vector.broadcast %cst_16 : f32 to vector<1x128xf32>
    %c2_17 = arith.constant 2 : index
    %c0_18 = arith.constant 0 : index
    %18 = vector.load %arg15[%c2_17, %c0_18] : memref<66x384xf32, #tpu.memory_space<vmem>>, vector<16x128xf32>
    tpu.vector_store %arg15[%c2_17, %c0_18], %16 {strides = array<i32>} : memref<66x384xf32, #tpu.memory_space<vmem>>, vector<16x128xf32>,
    %c1_19 = arith.constant 1 : index
    %c0_20 = arith.constant 0 : index
    %19 = vector.load %arg15[%c1_19, %c0_20] : memref<66x384xf32, #tpu.memory_space<vmem>>, vector<1x128xf32>
    tpu.vector_store %arg15[%c1_19, %c0_20], %17 {strides = array<i32>} : memref<66x384xf32, #tpu.memory_space<vmem>>, vector<1x128xf32>,
    %c1_21 = arith.constant 1 : index
    %c128_22 = arith.constant 128 : index
    %20 = vector.load %arg15[%c1_21, %c128_22] : memref<66x384xf32, #tpu.memory_space<vmem>>, vector<16x128xf32>
    tpu.vector_store %arg15[%c1_21, %c128_22], %16 {strides = array<i32>} : memref<66x384xf32, #tpu.memory_space<vmem>>, vector<16x128xf32>,
    %c0_23 = arith.constant 0 : index
    %c256_24 = arith.constant 256 : index
    %21 = vector.load %arg15[%c0_23, %c256_24] : memref<66x384xf32, #tpu.memory_space<vmem>>, vector<16x128xf32>
    tpu.vector_store %arg15[%c0_23, %c256_24], %16 {strides = array<i32>} : memref<66x384xf32, #tpu.memory_space<vmem>>, vector<16x128xf32>,
    %c16_25 = arith.constant 16 : index
    %c256_26 = arith.constant 256 : index
    %22 = vector.load %arg15[%c16_25, %c256_26] : memref<66x384xf32, #tpu.memory_space<vmem>>, vector<1x128xf32>
    tpu.vector_store %arg15[%c16_25, %c256_26], %17 {strides = array<i32>} : memref<66x384xf32, #tpu.memory_space<vmem>>, vector<1x128xf32>,
    %c1_27 = arith.constant 1 : index
    %c0_28 = arith.constant 0 : index
    %23 = vector.load %arg15[%c1_27, %c0_28] : memref<66x384xf32, #tpu.memory_space<vmem>>, vector<16x384xf32>
    %c0_29 = arith.constant 0 : index
    %c0_30 = arith.constant 0 : index
    %24 = vector.load %arg4[%c0_29, %c0_30] : memref<384x64xf32, #tpu.memory_space<vmem>>, vector<384x64xf32>
    %cst_31 = arith.constant dense<0.000000e+00> : vector<16x64xf32>
    %25 = tpu.matmul %23, %24, %cst_31 {dimension_numbers = #tpu.dot_dimension_numbers<[1], [0], [0], [1], [0, 0, 1, 1], [], []>} : vector<16x384xf32>, vector<384x64xf32>, vector<16x64xf32> -> vector<16x64xf32>
    %c0_32 = arith.constant 0 : index
    %c0_33 = arith.constant 0 : index
    %26 = vector.load %arg5[%c0_32, %c0_33] : memref<2x64xf32, #tpu.memory_space<vmem>>, vector<1x64xf32>
    %27 = vector.broadcast %26 : vector<1x64xf32> to vector<16x64xf32>
    %28 = arith.mulf %25, %27 : vector<16x64xf32>
    %c1_34 = arith.constant 1 : index
    %c0_35 = arith.constant 0 : index
    %29 = vector.load %arg5[%c1_34, %c0_35] : memref<2x64xf32, #tpu.memory_space<vmem>>, vector<1x64xf32>
    %30 = vector.broadcast %29 : vector<1x64xf32> to vector<16x64xf32>
    %31 = arith.addf %28, %30 : vector<16x64xf32>
    %cst_36 = arith.constant 0.000000e+00 : f32
    %32 = vector.broadcast %cst_36 : f32 to vector<16x64xf32>
    %33 = arith.maximumf %31, %32 : vector<16x64xf32>
    %c0_37 = arith.constant 0 : index
    %c0_38 = arith.constant 0 : index
    %34 = vector.load %arg6[%c0_37, %c0_38] : memref<32x16xf32, #tpu.memory_space<vmem>>, vector<32x16xf32>
    %cst_39 = arith.constant dense<0.000000e+00> : vector<32x64xf32>
    %35 = tpu.matmul %34, %33, %cst_39 {dimension_numbers = #tpu.dot_dimension_numbers<[1], [0], [0], [1], [0, 0, 1, 1], [], []>} : vector<32x16xf32>, vector<16x64xf32>, vector<32x64xf32> -> vector<32x64xf32>
    %c0_40 = arith.constant 0 : index
    %c0_41 = arith.constant 0 : index
    %36 = vector.load %arg7[%c0_40, %c0_41] : memref<64x128xf32, #tpu.memory_space<vmem>>, vector<64x128xf32>
    %cst_42 = arith.constant dense<0.000000e+00> : vector<32x128xf32>
    %37 = tpu.matmul %35, %36, %cst_42 {dimension_numbers = #tpu.dot_dimension_numbers<[1], [0], [0], [1], [0, 0, 1, 1], [], []>} : vector<32x64xf32>, vector<64x128xf32>, vector<32x128xf32> -> vector<32x128xf32>
    %cst_43 = arith.constant 0.000000e+00 : f32
    %38 = vector.broadcast %cst_43 : f32 to vector<1x128xf32>
    %c2_44 = arith.constant 2 : index
    %c0_45 = arith.constant 0 : index
    %39 = vector.load %arg15[%c2_44, %c0_45] : memref<66x384xf32, #tpu.memory_space<vmem>>, vector<32x128xf32>
    tpu.vector_store %arg15[%c2_44, %c0_45], %37 {strides = array<i32>} : memref<66x384xf32, #tpu.memory_space<vmem>>, vector<32x128xf32>,
    %c1_46 = arith.constant 1 : index
    %c0_47 = arith.constant 0 : index
    %40 = vector.load %arg15[%c1_46, %c0_47] : memref<66x384xf32, #tpu.memory_space<vmem>>, vector<1x128xf32>
    tpu.vector_store %arg15[%c1_46, %c0_47], %38 {strides = array<i32>} : memref<66x384xf32, #tpu.memory_space<vmem>>, vector<1x128xf32>,
    %c1_48 = arith.constant 1 : index
    %c128_49 = arith.constant 128 : index
    %41 = vector.load %arg15[%c1_48, %c128_49] : memref<66x384xf32, #tpu.memory_space<vmem>>, vector<32x128xf32>
    tpu.vector_store %arg15[%c1_48, %c128_49], %37 {strides = array<i32>} : memref<66x384xf32, #tpu.memory_space<vmem>>, vector<32x128xf32>,
    %c0_50 = arith.constant 0 : index
    %c256_51 = arith.constant 256 : index
    %42 = vector.load %arg15[%c0_50, %c256_51] : memref<66x384xf32, #tpu.memory_space<vmem>>, vector<32x128xf32>
    tpu.vector_store %arg15[%c0_50, %c256_51], %37 {strides = array<i32>} : memref<66x384xf32, #tpu.memory_space<vmem>>, vector<32x128xf32>,
    %c32 = arith.constant 32 : index
    %c256_52 = arith.constant 256 : index
    %43 = vector.load %arg15[%c32, %c256_52] : memref<66x384xf32, #tpu.memory_space<vmem>>, vector<1x128xf32>
    tpu.vector_store %arg15[%c32, %c256_52], %38 {strides = array<i32>} : memref<66x384xf32, #tpu.memory_space<vmem>>, vector<1x128xf32>,
    %c1_53 = arith.constant 1 : index
    %c0_54 = arith.constant 0 : index
    %44 = vector.load %arg15[%c1_53, %c0_54] : memref<66x384xf32, #tpu.memory_space<vmem>>, vector<32x384xf32>
    %c0_55 = arith.constant 0 : index
    %c0_56 = arith.constant 0 : index
    %45 = vector.load %arg8[%c0_55, %c0_56] : memref<384x64xf32, #tpu.memory_space<vmem>>, vector<384x64xf32>
    %cst_57 = arith.constant dense<0.000000e+00> : vector<32x64xf32>
    %46 = tpu.matmul %44, %45, %cst_57 {dimension_numbers = #tpu.dot_dimension_numbers<[1], [0], [0], [1], [0, 0, 1, 1], [], []>} : vector<32x384xf32>, vector<384x64xf32>, vector<32x64xf32> -> vector<32x64xf32>
    %c0_58 = arith.constant 0 : index
    %c0_59 = arith.constant 0 : index
    %47 = vector.load %arg9[%c0_58, %c0_59] : memref<2x64xf32, #tpu.memory_space<vmem>>, vector<1x64xf32>
    %48 = vector.broadcast %47 : vector<1x64xf32> to vector<32x64xf32>
    %49 = arith.mulf %46, %48 : vector<32x64xf32>
    %c1_60 = arith.constant 1 : index
    %c0_61 = arith.constant 0 : index
    %50 = vector.load %arg9[%c1_60, %c0_61] : memref<2x64xf32, #tpu.memory_space<vmem>>, vector<1x64xf32>
    %51 = vector.broadcast %50 : vector<1x64xf32> to vector<32x64xf32>
    %52 = arith.addf %49, %51 : vector<32x64xf32>
    %cst_62 = arith.constant 0.000000e+00 : f32
    %53 = vector.broadcast %cst_62 : f32 to vector<32x64xf32>
    %54 = arith.maximumf %52, %53 : vector<32x64xf32>
    %c0_63 = arith.constant 0 : index
    %c0_64 = arith.constant 0 : index
    %55 = vector.load %arg10[%c0_63, %c0_64] : memref<64x32xf32, #tpu.memory_space<vmem>>, vector<64x32xf32>
    %cst_65 = arith.constant dense<0.000000e+00> : vector<64x64xf32>
    %56 = tpu.matmul %55, %54, %cst_65 {dimension_numbers = #tpu.dot_dimension_numbers<[1], [0], [0], [1], [0, 0, 1, 1], [], []>} : vector<64x32xf32>, vector<32x64xf32>, vector<64x64xf32> -> vector<64x64xf32>
    %c0_66 = arith.constant 0 : index
    %c0_67 = arith.constant 0 : index
    %57 = vector.load %arg11[%c0_66, %c0_67] : memref<64x128xf32, #tpu.memory_space<vmem>>, vector<64x128xf32>
    %cst_68 = arith.constant dense<0.000000e+00> : vector<64x128xf32>
    %58 = tpu.matmul %56, %57, %cst_68 {dimension_numbers = #tpu.dot_dimension_numbers<[1], [0], [0], [1], [0, 0, 1, 1], [], []>} : vector<64x64xf32>, vector<64x128xf32>, vector<64x128xf32> -> vector<64x128xf32>
    %cst_69 = arith.constant 0.000000e+00 : f32
    %59 = vector.broadcast %cst_69 : f32 to vector<1x128xf32>
    %c2_70 = arith.constant 2 : index
    %c0_71 = arith.constant 0 : index
    %60 = vector.load %arg15[%c2_70, %c0_71] : memref<66x384xf32, #tpu.memory_space<vmem>>, vector<64x128xf32>
    tpu.vector_store %arg15[%c2_70, %c0_71], %58 {strides = array<i32>} : memref<66x384xf32, #tpu.memory_space<vmem>>, vector<64x128xf32>,
    %c1_72 = arith.constant 1 : index
    %c0_73 = arith.constant 0 : index
    %61 = vector.load %arg15[%c1_72, %c0_73] : memref<66x384xf32, #tpu.memory_space<vmem>>, vector<1x128xf32>
    tpu.vector_store %arg15[%c1_72, %c0_73], %59 {strides = array<i32>} : memref<66x384xf32, #tpu.memory_space<vmem>>, vector<1x128xf32>,
    %c1_74 = arith.constant 1 : index
    %c128_75 = arith.constant 128 : index
    %62 = vector.load %arg15[%c1_74, %c128_75] : memref<66x384xf32, #tpu.memory_space<vmem>>, vector<64x128xf32>
    tpu.vector_store %arg15[%c1_74, %c128_75], %58 {strides = array<i32>} : memref<66x384xf32, #tpu.memory_space<vmem>>, vector<64x128xf32>,
    %c0_76 = arith.constant 0 : index
    %c256_77 = arith.constant 256 : index
    %63 = vector.load %arg15[%c0_76, %c256_77] : memref<66x384xf32, #tpu.memory_space<vmem>>, vector<64x128xf32>
    tpu.vector_store %arg15[%c0_76, %c256_77], %58 {strides = array<i32>} : memref<66x384xf32, #tpu.memory_space<vmem>>, vector<64x128xf32>,
    %c64 = arith.constant 64 : index
    %c256_78 = arith.constant 256 : index
    %64 = vector.load %arg15[%c64, %c256_78] : memref<66x384xf32, #tpu.memory_space<vmem>>, vector<1x128xf32>
    tpu.vector_store %arg15[%c64, %c256_78], %59 {strides = array<i32>} : memref<66x384xf32, #tpu.memory_space<vmem>>, vector<1x128xf32>,
    %c1_79 = arith.constant 1 : index
    %c0_80 = arith.constant 0 : index
    %65 = vector.load %arg15[%c1_79, %c0_80] : memref<66x384xf32, #tpu.memory_space<vmem>>, vector<64x384xf32>
    %c0_81 = arith.constant 0 : index
    %c0_82 = arith.constant 0 : index
    %66 = vector.load %arg12[%c0_81, %c0_82] : memref<384x128xf32, #tpu.memory_space<vmem>>, vector<384x128xf32>
    %cst_83 = arith.constant dense<0.000000e+00> : vector<64x128xf32>
    %67 = tpu.matmul %65, %66, %cst_83 {dimension_numbers = #tpu.dot_dimension_numbers<[1], [0], [0], [1], [0, 0, 1, 1], [], []>} : vector<64x384xf32>, vector<384x128xf32>, vector<64x128xf32> -> vector<64x128xf32>
    %c0_84 = arith.constant 0 : index
    %c0_85 = arith.constant 0 : index
    %68 = vector.load %arg13[%c0_84, %c0_85] : memref<2x128xf32, #tpu.memory_space<vmem>>, vector<1x128xf32>
    %69 = vector.broadcast %68 : vector<1x128xf32> to vector<64x128xf32>
    %70 = arith.mulf %67, %69 : vector<64x128xf32>
    %c1_86 = arith.constant 1 : index
    %c0_87 = arith.constant 0 : index
    %71 = vector.load %arg13[%c1_86, %c0_87] : memref<2x128xf32, #tpu.memory_space<vmem>>, vector<1x128xf32>
    %72 = vector.broadcast %71 : vector<1x128xf32> to vector<64x128xf32>
    %73 = arith.addf %70, %72 : vector<64x128xf32>
    %c0_88 = arith.constant 0 : index
    %c0_89 = arith.constant 0 : index
    %c0_90 = arith.constant 0 : index
    %74 = vector.load %arg14[%c0_88, %c0_89, %c0_90] : memref<1x64x128xf32, #tpu.memory_space<vmem>>, vector<1x64x128xf32>
    %75 = vector.shape_cast %74 : vector<1x64x128xf32> to vector<64x128xf32>
    %76 = vector.shape_cast %73 : vector<64x128xf32> to vector<1x64x128xf32>
    tpu.vector_store %arg14[%c0_88, %c0_89, %c0_90], %76 {strides = array<i32>} : memref<1x64x128xf32, #tpu.memory_space<vmem>>, vector<1x64x128xf32>,
    return
  }
  func.func @transform_0(%arg0: i32) -> (i32, i32, i32) {
    %c0_i32 = arith.constant 0 : i32
    %c0_i32_0 = arith.constant 0 : i32
    %c0_i32_1 = arith.constant 0 : i32
    return %arg0, %c0_i32, %c0_i32_0 : i32, i32, i32
  }
  func.func @transform_1(%arg0: i32) -> (i32, i32) {
    %c0_i32 = arith.constant 0 : i32
    %c0_i32_0 = arith.constant 0 : i32
    %c0_i32_1 = arith.constant 0 : i32
    return %c0_i32, %c0_i32_0 : i32, i32
  }
  func.func @transform_2(%arg0: i32) -> (i32, i32) {
    %c0_i32 = arith.constant 0 : i32
    %c0_i32_0 = arith.constant 0 : i32
    %c0_i32_1 = arith.constant 0 : i32
    return %c0_i32, %c0_i32_0 : i32, i32
  }
  func.func @transform_3(%arg0: i32) -> (i32, i32) {
    %c0_i32 = arith.constant 0 : i32
    %c0_i32_0 = arith.constant 0 : i32
    %c0_i32_1 = arith.constant 0 : i32
    return %c0_i32, %c0_i32_0 : i32, i32
  }
  func.func @transform_4(%arg0: i32) -> (i32, i32) {
    %c0_i32 = arith.constant 0 : i32
    %c0_i32_0 = arith.constant 0 : i32
    %c0_i32_1 = arith.constant 0 : i32
    return %c0_i32, %c0_i32_0 : i32, i32
  }
  func.func @transform_5(%arg0: i32) -> (i32, i32) {
    %c0_i32 = arith.constant 0 : i32
    %c0_i32_0 = arith.constant 0 : i32
    %c0_i32_1 = arith.constant 0 : i32
    return %c0_i32, %c0_i32_0 : i32, i32
  }
  func.func @transform_6(%arg0: i32) -> (i32, i32) {
    %c0_i32 = arith.constant 0 : i32
    %c0_i32_0 = arith.constant 0 : i32
    %c0_i32_1 = arith.constant 0 : i32
    return %c0_i32, %c0_i32_0 : i32, i32
  }
  func.func @transform_7(%arg0: i32) -> (i32, i32) {
    %c0_i32 = arith.constant 0 : i32
    %c0_i32_0 = arith.constant 0 : i32
    %c0_i32_1 = arith.constant 0 : i32
    return %c0_i32, %c0_i32_0 : i32, i32
  }
  func.func @transform_8(%arg0: i32) -> (i32, i32) {
    %c0_i32 = arith.constant 0 : i32
    %c0_i32_0 = arith.constant 0 : i32
    %c0_i32_1 = arith.constant 0 : i32
    return %c0_i32, %c0_i32_0 : i32, i32
  }
  func.func @transform_9(%arg0: i32) -> (i32, i32) {
    %c0_i32 = arith.constant 0 : i32
    %c0_i32_0 = arith.constant 0 : i32
    %c0_i32_1 = arith.constant 0 : i32
    return %c0_i32, %c0_i32_0 : i32, i32
  }
  func.func @transform_10(%arg0: i32) -> (i32, i32) {
    %c0_i32 = arith.constant 0 : i32
    %c0_i32_0 = arith.constant 0 : i32
    %c0_i32_1 = arith.constant 0 : i32
    return %c0_i32, %c0_i32_0 : i32, i32
  }
  func.func @transform_11(%arg0: i32) -> (i32, i32) {
    %c0_i32 = arith.constant 0 : i32
    %c0_i32_0 = arith.constant 0 : i32
    %c0_i32_1 = arith.constant 0 : i32
    return %c0_i32, %c0_i32_0 : i32, i32
  }
  func.func @transform_12(%arg0: i32) -> (i32, i32) {
    %c0_i32 = arith.constant 0 : i32
    %c0_i32_0 = arith.constant 0 : i32
    %c0_i32_1 = arith.constant 0 : i32
    return %c0_i32, %c0_i32_0 : i32, i32
  }
  func.func @transform_13(%arg0: i32) -> (i32, i32, i32) {
    %c0_i32 = arith.constant 0 : i32
    %c0_i32_0 = arith.constant 0 : i32
    %c0_i32_1 = arith.constant 0 : i32
    return %arg0, %c0_i32, %c0_i32_0 : i32, i32, i32
  }
}

</mosaic_0001>

<bundles_post_ra>
// kernel: forward.1
= control target key start
LH: loop header
LB: loop body
LE: loop exit
PB: predicated region body
PF: predicated region fallthrough
CT: control target
= control target key end

     0   :  { %18 = vsyncpa [#allocation4], 0  ;;  %s4084_s0 = inlined_call_operand.vmem [shape: f32[2,16,128], index: 0, kind: input, shape index: {}]   ;;  %s4085_s1 = inlined_call_operand.hbm [shape: f32[384,128], index: 1, kind: input, shape index: {}]   ;;  %s4086_s2 = inlined_call_operand.hbm [shape: f32[2,128], index: 2, kind: input, shape index: {}]   ;;  %s4087_s3 = inlined_call_operand.hbm [shape: f32[384,64], index: 3, kind: input, shape index: {}]   ;;  %s4088_s4 = inlined_call_operand.vmem [shape: f32[2,64], index: 4, kind: input, shape index: {}]   ;;  %s4089_s5 = inlined_call_operand.vmem [shape: f32[32,16], index: 5, kind: input, shape index: {}]   ;;  %s4090_s6 = inlined_call_operand.hbm [shape: f32[64,128], index: 6, kind: input, shape index: {}]   ;;  %s4091_s7 = inlined_call_operand.vmem [shape: f32[384,64], index: 7, kind: input, shape index: {}]   ;;  %s4092_s8 = inlined_call_operand.vmem [shape: f32[2,64], index: 8, kind: input, shape index: {}]   ;;  %s4093_s9 = inlined_call_operand.hbm [shape: f32[64,32], index: 9, kind: input, shape index: {}]   ;;  %s4094_s10 = inlined_call_operand.hbm [shape: f32[64,128], index: 10, kind: input, shape index: {}]   ;;  %s4095_s11 = inlined_call_operand.vmem [shape: f32[384,128], index: 11, kind: input, shape index: {}]   ;;  %s4096_s12 = inlined_call_operand.vmem [shape: f32[2,128], index: 12, kind: input, shape index: {}]   ;;  %s4097_s13 = inlined_call_operand.vmem [shape: f32[2,64,128], index: 13, kind: output, shape index: {}]  }
   0x1   :  { %19 = vsyncpa [#allocation6], 0 }
   0x2   :  { %20 = vsyncpa [#allocation9], 0 }
   0x3   :  { %21 = vsyncpa [#allocation12], 0  ;;  %s3462_s25 = smov 0  }
   0x4 LB: > { %s3383_s26 = smov [#allocation5]   ;;  %s3468_s28 = sadd.s32 4294967295, %s3381_s25   ;;  %s3381_s25 = sphi %s3462_s25, %s27_s25  }
   0x5   : > { %s362_s27 = sshll.u32 %s3383_s26, 4  ;;  %p2542_p0 = scmp.ge.s32.totalorder %s3381_s25, 1  ;;  %s363_s27 = int_to_ptr.vmem [resolvable:$true] %s362_s27 }
   0x6   : > { %p336_p1 = scmp.lt.s32.totalorder %s3381_s25, 3  ;;  %p3174_p2 = scmp.eq.s32.totalorder %s3468_s28, 0 }
   0x7   : > { %s3384_s30 = smov [#allocation8]   ;;  %s3385_s16 = smov [#allocation3]  }
   0x8   : > { %p3473_p3 = pnand %p2542_p0, %p336_p1  ;;  %s391_s14 = sshll.u32 %s3384_s30, 4  ;;  %s3479_s14 = int_to_ptr.vmem [resolvable:$true] %s391_s14 }
   0x9   : > { %s348_s17 = sshll.u32 %s3385_s16, 4  ;;  %s3386_s18 = smov [#allocation7]   ;;  %s3487_s17 = int_to_ptr.vmem [resolvable:$true] %s348_s17 }
   0xa   : > { %p3155_p4 = pneg %p3473_p3  ;;  %s3489_s19 = sshll.u32 %s3386_s18, 4  ;;  %s373_s19 = int_to_ptr.vmem [resolvable:$true] %s3489_s19 }
   0xb   : > { %s3214_s21 = scalar_lea.vmem %s363_s27, 32  ;;  %p3222_p10 = scmp.lt.s32.totalorder %s363_s27, %s363_s27 }
   0xc   : > { %p3483_p5 = pnand %p3174_p2, %p3155_p4  ;;  %p3215_p7 = scmp.ne.s32.totalorder %s363_s27, %s3214_s21 }
   0xd   : > { %p3223_p11 = scmp.lt.s32.totalorder %s3214_s21, %s3214_s21 }
   0xe   : > { %p3493_p6 = pneg %p3483_p5 }
   0xf   : > { %p3224_p12 = por %p3223_p11, %p3222_p10 }
  0x10   : > { %p3217_p8 = pnand %p3215_p7, %p3493_p6 }
  0x12   : > { %p3218_p9 = pneg %p3217_p8 }
  0x14   : > { %p3225_p13 = pnand %p3224_p12, %p3218_p9 }
  0x16   : > { %3228 = shalt.err (!%p3225_p13)
}
  0x17   : > { %3161 = dma.hbm_to_vmem [thread:$0]  (!%p3483_p5), %s4086_s2, 32, %s363_s27, [#allocation6]  }
  0x18   : > { %s3240_s24 = scalar_lea.vmem %s3479_s14, 1024  ;;  %p3248_p7 = scmp.lt.s32.totalorder %s3479_s14, %s3479_s14 }
  0x19   : > { %p3241_p0 = scmp.ne.s32.totalorder %s3479_s14, %s3240_s24  ;;  %p3249_p8 = scmp.lt.s32.totalorder %s3240_s24, %s3240_s24 }
  0x1b   : > { %p3243_p1 = pnand %p3241_p0, %p3493_p6  ;;  %p3250_p9 = por %p3249_p8, %p3248_p7 }
  0x1d   : > { %p3244_p4 = pneg %p3243_p1 }
  0x1f   : > { %p3251_p10 = pnand %p3250_p9, %p3244_p4 }
  0x21   : > { %3254 = shalt.err (!%p3251_p10)
}
  0x22   : > { %s3387_s26 = smov 128   ;;  %s3388_s30 = smov 8  }
  0x23   : > { %3167 = dma.hbm_to_vmem [thread:$0]  (!%p3483_p5), %s4090_s6, 1024, %s3479_s14, [#allocation9], %s3387_s26, %s3387_s26, %s3388_s30  }
  0x24   : > { %s3266_s18 = scalar_lea.vmem %s3487_s17, 6144  ;;  %p3274_p0 = scmp.lt.s32.totalorder %s3487_s17, %s3487_s17 }
  0x25   : > { %p3267_p11 = scmp.ne.s32.totalorder %s3487_s17, %s3266_s18  ;;  %p3275_p1 = scmp.lt.s32.totalorder %s3266_s18, %s3266_s18 }
  0x27   : > { %p3269_p12 = pnand %p3267_p11, %p3493_p6  ;;  %p3276_p4 = por %p3275_p1, %p3274_p0 }
  0x29   : > { %p3270_p13 = pneg %p3269_p12 }
  0x2b   : > { %p3277_p7 = pnand %p3276_p4, %p3270_p13 }
  0x2d   : > { %3280 = shalt.err (!%p3277_p7)
}
  0x2e   : > { %3158 = dma.hbm_to_vmem [thread:$0]  (!%p3483_p5), %s4085_s1, 6144, %s3487_s17, [#allocation4], %s3387_s26, %s3387_s26, %s3388_s30  }
  0x2f   : > { %s3292_s14 = scalar_lea.vmem %s373_s19, 6144  ;;  %p3300_p11 = scmp.lt.s32.totalorder %s373_s19, %s373_s19 }
  0x30   : > { %p3293_p8 = scmp.ne.s32.totalorder %s373_s19, %s3292_s14  ;;  %p3301_p12 = scmp.lt.s32.totalorder %s3292_s14, %s3292_s14 }
  0x32   : > { %p3295_p9 = pnand %p3293_p8, %p3493_p6  ;;  %p3302_p13 = por %p3301_p12, %p3300_p11 }
  0x34   : > { %p3296_p10 = pneg %p3295_p9 }
  0x36   : > { %p3303_p0 = pnand %p3302_p13, %p3296_p10 }
  0x38   : > { %3306 = shalt.err (!%p3303_p0)
}
  0x39   : > { %3164 = dma.hbm_to_vmem [thread:$0]  (!%p3483_p5), %s4087_s3, 6144, %s373_s19, [#allocation6], %s3387_s26, %s3387_s26, %s3388_s30  }
  0x3a   : > { %s3389_s17 = smov [#allocation10]   ;;  %s3390_s16 = smov [#allocation11]  }
  0x3b   : > { %s410_s27 = sshll.u32 %s3389_s17, 4  ;;  %s423_s18 = sshll.u32 %s3390_s16, 4  ;;  %s411_s27 = int_to_ptr.vmem [resolvable:$true] %s410_s27  ;;  %s424_s18 = int_to_ptr.vmem [resolvable:$true] %s423_s18 }
  0x3c   : > { %s3318_s21 = scalar_lea.vmem %s411_s27, 1024  ;;  %p3326_p8 = scmp.lt.s32.totalorder %s411_s27, %s411_s27 }
  0x3d   : > { %p3319_p1 = scmp.ne.s32.totalorder %s411_s27, %s3318_s21  ;;  %p3327_p9 = scmp.lt.s32.totalorder %s3318_s21, %s3318_s21 }
  0x3f   : > { %p3321_p4 = pnand %p3319_p1, %p3493_p6  ;;  %p3328_p10 = por %p3327_p9, %p3326_p8 }
  0x41   : > { %p3322_p7 = pneg %p3321_p4 }
  0x43   : > { %p3329_p11 = pnand %p3328_p10, %p3322_p7 }
  0x45   : > { %3332 = shalt.err (!%p3329_p11)
}
  0x46   : > { %3170 = dma.hbm_to_vmem [thread:$0]  (!%p3483_p5), %s4093_s9, 1024, %s411_s27, [#allocation9], %s3387_s26, %s3387_s26, %s3388_s30  }
  0x47   : > { %s3344_s14 = scalar_lea.vmem %s424_s18, 1024  ;;  %p3352_p1 = scmp.lt.s32.totalorder %s424_s18, %s424_s18 }
  0x48   : > { %p3345_p12 = scmp.ne.s32.totalorder %s424_s18, %s3344_s14  ;;  %p3353_p4 = scmp.lt.s32.totalorder %s3344_s14, %s3344_s14 }
  0x4a   : > { %p3347_p13 = pnand %p3345_p12, %p3493_p6  ;;  %p3354_p7 = por %p3353_p4, %p3352_p1 }
  0x4c   : > { %p3348_p0 = pneg %p3347_p13 }
  0x4e   : > { %p3355_p8 = pnand %p3354_p7, %p3348_p0 }
  0x50   : > { %3358 = shalt.err (!%p3355_p8)
}
  0x51   : > { %3173 = dma.hbm_to_vmem [thread:$0]  (!%p3483_p5), %s4094_s10, 1024, %s424_s18, [#allocation12], %s3387_s26, %s3387_s26, %s3388_s30  }
  0x52   : > { %453 = sbr.rel (%p3473_p3) target bundleno = 1827 (0x723), region = 72 }
  0x57   : > { %3364 = dma.done.wait (%p3174_p2), [#allocation4], 6144  }
  0x58   : > { %3366 = vsyncadd (%p3174_p2), [#allocation4], 4294961152 }
  0x59   : > { %3368 = dma.done.wait (%p3174_p2), [#allocation6], 6176  }
  0x5a   : > { %3370 = vsyncadd (%p3174_p2), [#allocation6], 4294961120 }
  0x5b   : > { %3372 = dma.done.wait (%p3174_p2), [#allocation9], 2048  }
  0x5c   : > { %3374 = vsyncadd (%p3174_p2), [#allocation9], 4294965248 }
  0x5d   : > { %3376 = dma.done.wait (%p3174_p2), [#allocation12], 1024  }
  0x5e   : > { %3378 = vsyncadd (%p3174_p2), [#allocation12], 4294966272  ;;  %v3391_v0 = vmov 0.0   ;;  %v595_v1 = vld [vmem:[#allocation3 + $0xf8] sm:$0xff]  ;;  %v594_v3 = vld [vmem:[#allocation3 + $0xf0] sm:$0xff]  ;;  %p517_p3 = scmp.lt.s32.totalorder %s3468_s28, 1 }
  0x5f   : > { %541 = vst [vmem:[#allocation2 + $0x1] sm:$0x1] %v3391_v0  ;;  %554 = vst [vmem:[#allocation2 + $0x40] sm:$0x1] %v3391_v0  ;;  %v579_v2 = vld [vmem:[#allocation3 + $0x78] sm:$0xff]  ;;  %2597 = vmatprep.subr.mxu0 %v595_v1  ;;  %v578_v5 = vld [vmem:[#allocation3 + $0x70] sm:$0xff] }
  0x60   : > { %1335 = vst [vmem:[#allocation2 + $0x70] sm:$0x1] %v3391_v0  ;;  %2003 = vst [vmem:[#allocation2 + $0xd0] sm:$0x1] %v3391_v0  ;;  %v611_v4 = vld [vmem:[#allocation3 + $0x178] sm:$0xff]  ;;  %2598 = vmatpush3.msra.mxu0 %v579_v2  ;;  %v593_v6 = vld [vmem:[#allocation3 + $0xe8] sm:$0xff] }
  0x61   : > { %2899 = vmatprep.subr.mxu1 %v611_v4  ;;  %v610_v7 = vld [vmem:[#allocation3 + $0x170] sm:$0xff]  ;;  %2599 = vmatprep.subr.mxu0 %v594_v3  ;;  %v577_v8 = vld [vmem:[#allocation3 + $0x68] sm:$0xff]  ;;  %v592_v10 = vld [vmem:[#allocation3 + $0xe0] sm:$0xff]  ;;  %s4102_s28 = smov (!%p517_p3, %s3468_s28), 1  ;;  %vm542_vm0 = vcmask 1040384   ;;  %vm531_vm1 = vcmask 1041408  }
  0x62   : > { %2900 = vmatpush3.msra.mxu1 %v611_v4  ;;  %v609_v9 = vld [vmem:[#allocation3 + $0x168] sm:$0xff]  ;;  %2600 = vmatpush3.msra.mxu0 %v578_v5  ;;  %v576_v11 = vld [vmem:[#allocation3 + $0x60] sm:$0xff]  ;;  %v591_v13 = vld [vmem:[#allocation3 + $0xd8] sm:$0xff]  ;;  %s2595_s29 = sshll.u32 %s4102_s28, 4  ;;  %vm621_vm2 = vcmask 1046528   ;;  %vm1088_vm3 = vcmask 130048  }
  0x63   : > { %2901 = vmatprep.subr.mxu1 %v610_v7  ;;  %2601 = vmatprep.subr.mxu0 %v593_v6  ;;  %v608_v12 = vld [vmem:[#allocation3 + $0x160] sm:$0xff]  ;;  %v575_v14 = vld [vmem:[#allocation3 + $0x58] sm:$0xff]  ;;  %v590_v16 = vld [vmem:[#allocation3 + $0xd0] sm:$0xff]  ;;  %s521_s26 = scalar_lea.vmem %s4084_s0, %s2595_s29  ;;  %vm1194_vm4 = vcmask 523264   ;;  %vm1653_vm5 = vcmask 261120   ;;  %s2596_s30 = sshll.u32 %s4102_s28, 6 }
  0x64   : > { %2902 = vmatpush3.msra.mxu1 %v610_v7  ;;  %2602 = vmatpush3.msra.mxu0 %v577_v8  ;;  %v607_v15 = vld [vmem:[#allocation3 + $0x158] sm:$0xff]  ;;  %v574_v17 = vld [vmem:[#allocation3 + $0x50] sm:$0xff]  ;;  %v589_v19 = vld [vmem:[#allocation3 + $0xc8] sm:$0xff]  ;;  %s4071_s21 = scalar_lea.vmem %s4097_s13, %s2596_s30 }
  0x65   : > { %2903 = vmatprep.subr.mxu1 %v609_v9  ;;  %2603 = vmatprep.subr.mxu0 %v592_v10  ;;  %v606_v18 = vld [vmem:[#allocation3 + $0x150] sm:$0xff]  ;;  %v573_v20 = vld [vmem:[#allocation3 + $0x48] sm:$0xff]  ;;  %v588_v22 = vld [vmem:[#allocation3 + $0xc0] sm:$0xff] }
  0x66   : > { %2904 = vmatpush3.msra.mxu1 %v609_v9  ;;  %2604 = vmatpush3.msra.mxu0 %v576_v11  ;;  %v605_v21 = vld [vmem:[#allocation3 + $0x148] sm:$0xff]  ;;  %v572_v23 = vld [vmem:[#allocation3 + $0x40] sm:$0xff]  ;;  %v587_v25 = vld [vmem:[#allocation3 + $0xb8] sm:$0xff] }
  0x67   : > { %2905 = vmatprep.subr.mxu1 %v608_v12  ;;  %2605 = vmatprep.subr.mxu0 %v591_v13  ;;  %v604_v24 = vld [vmem:[#allocation3 + $0x140] sm:$0xff]  ;;  %v571_v26 = vld [vmem:[#allocation3 + $0x38] sm:$0xff]  ;;  %v527_v28 = vld [vmem:[%s521_s26] sm:$0xff] }
  0x68   : > { %2906 = vmatpush3.msra.mxu1 %v608_v12  ;;  %2606 = vmatpush3.msra.mxu0 %v575_v14  ;;  %v603_v27 = vld [vmem:[#allocation3 + $0x138] sm:$0xff]  ;;  %v586_v29 = vld [vmem:[#allocation3 + $0xb0] sm:$0xff]  ;;  %v543_v31 = vrot.slane %v527_v28, 7  ;;  %552 = vst [vmem:[#allocation2 + $0x10] sm:$0xff] %v527_v28  ;;  %v532_v32 = vrot.slane %v527_v28, 6  ;;  %v585_v38 = vld [vmem:[#allocation3 + $0xa8] sm:$0xff] }
  0x69   : > { %2907 = vmatprep.subr.mxu1 %v607_v15  ;;  %2607 = vmatprep.subr.mxu0 %v590_v16  ;;  %v3597_v30 = vld [vmem:[%s521_s26 + $0x8] sm:$0xff]  ;;  %v3599_v33 = vld [vmem:[#allocation2 + $0x40] sm:$0x1]  ;;  %v584_v41 = vld [vmem:[#allocation3 + $0xa0] sm:$0xff] }
  0x6a   : > { %2908 = vmatpush3.msra.mxu1 %v607_v15  ;;  %2608 = vmatpush3.msra.mxu0 %v574_v17  ;;  %v570_v34 = vld [vmem:[#allocation3 + $0x30] sm:$0xff]  ;;  %v544_v36 = vrot.slane %v3597_v30, 7  ;;  %v533_v37 = vrot.slane %v3597_v30, 6  ;;  %830 = vst [vmem:[#allocation2 + $0x40] sm:$0x1] %v3391_v0  ;;  %v569_v39 = vld [vmem:[#allocation3 + $0x28] sm:$0xff] }
  0x6b   : > { %2909 = vmatprep.subr.mxu1 %v606_v18  ;;  %2609 = vmatprep.subr.mxu0 %v589_v19  ;;  %v602_v35 = vld [vmem:[#allocation3 + $0x130] sm:$0xff]  ;;  %549 = vst [vmem:[#allocation2 + $0x8] sm:$0xfe] %v543_v31  ;;  %538 = vst [vmem:[#allocation2] sm:$0xfc] %v532_v32  ;;  %v601_v40 = vld [vmem:[#allocation3 + $0x128] sm:$0xff] }
  0x6c   : > { %2910 = vmatpush3.msra.mxu1 %v606_v18  ;;  %2610 = vmatpush3.msra.mxu0 %v573_v20  ;;  %551 = vst [vmem:[#allocation2 + $0x38] sm:$0x1] %v544_v36  ;;  %540 = vst [vmem:[#allocation2 + $0x30] sm:$0x3] %v533_v37  ;;  %v568_v42 = vld [vmem:[#allocation3 + $0x20] sm:$0xff]  ;;  %v545_v44 = vsel %vm542_vm0, %v543_v31, %v544_v36  ;;  %v583_v45 = vld [vmem:[#allocation3 + $0x98] sm:$0xff]  ;;  %v534_v48 = vsel %vm531_vm1, %v532_v32, %v533_v37 }
  0x6d   : > { %2911 = vmatprep.subr.mxu1 %v605_v21  ;;  %2611 = vmatprep.subr.mxu0 %v588_v22  ;;  %v600_v43 = vld [vmem:[#allocation3 + $0x120] sm:$0xff]  ;;  %v567_v46 = vld [vmem:[#allocation3 + $0x18] sm:$0xff]  ;;  %v582_v49 = vld [vmem:[#allocation3 + $0x90] sm:$0xff]  ;;  %v626_v51 = vrot.slane %v545_v44, 1  ;;  %v623_v59 = vrot.slane %v534_v48, 1  ;;  %v629_v1 = vrot.slane %v3597_v30, 1 }
  0x6e   : > { %2912 = vmatpush3.msra.mxu1 %v605_v21  ;;  %2612 = vmatpush3.msra.mxu0 %v572_v23  ;;  %v599_v47 = vld [vmem:[#allocation3 + $0x118] sm:$0xff]  ;;  %v566_v50 = vld [vmem:[#allocation3 + $0x10] sm:$0xff]  ;;  %v581_v56 = vld [vmem:[#allocation3 + $0x88] sm:$0xff]  ;;  %v635_v5 = vrot.slane %v3599_v33, 1 }
  0x6f   : > { %2913 = vmatprep.subr.mxu1 %v604_v24  ;;  %2613 = vmatprep.subr.mxu0 %v587_v25  ;;  %v557_v52 = vld [vmem:[#allocation2 + $0x10] sm:$0xfe]  ;;  %v598_v53 = vld [vmem:[#allocation3 + $0x110] sm:$0xff]  ;;  %v565_v61 = vld [vmem:[#allocation3 + $0x8] sm:$0xff] }
  0x70   : > { %2914 = vmatpush3.msra.mxu1 %v604_v24  ;;  %2614 = vmatpush3.msra.mxu0 %v571_v26  ;;  %v597_v62 = vld [vmem:[#allocation3 + $0x108] sm:$0xff]  ;;  %v628_v63 = vrot.slane %v557_v52, 1  ;;  %v580_v3 = vld [vmem:[#allocation3 + $0x80] sm:$0xff]  ;;  %v636_v12 = vsel %vm621_vm2, %v629_v1, %v635_v5  ;;  %v886_v17 = vld [vmem:[#allocation7 + $0x170] sm:$0xff] }
  0x71   : > { %2915 = vmatprep.subr.mxu1 %v603_v27  ;;  %2615 = vmatprep.subr.mxu0 %v586_v29  ;;  %v564_v7 = vld [vmem:[#allocation3] sm:$0xff]  ;;  %v885_v19 = vld [vmem:[#allocation7 + $0x168] sm:$0xff]  ;;  %v870_v20 = vld [vmem:[#allocation7 + $0xf0] sm:$0xff] }
  0x72   : > { %2916 = vmatpush3.msra.mxu1 %v603_v27  ;;  %2616 = vmatpush3.msra.mxu0 %v570_v34  ;;  %v556_v54 = vld [vmem:[#allocation2 + $0x8] sm:$0xfe]  ;;  %v555_v55 = vld [vmem:[#allocation2] sm:$0xfe]  ;;  %v596_v9 = vld [vmem:[#allocation3 + $0x100] sm:$0xff]  ;;  %v630_v11 = vsel %vm621_vm2, %v628_v63, %v629_v1 }
  0x73   : > { %2917 = vmatprep.subr.mxu1 %v602_v35  ;;  %2617 = vmatprep.subr.mxu0 %v585_v38  ;;  %v625_v57 = vrot.slane %v556_v54, 1  ;;  %v622_v58 = vrot.slane %v555_v55, 1  ;;  %818 = vst [vmem:[#allocation2 + $0x1] sm:$0x1] %v3391_v0  ;;  %v562_v60 = vld [vmem:[#allocation2 + $0x38] sm:$0x1] }
  0x74   : > { %2918 = vmatpush3.msra.mxu1 %v602_v35  ;;  %2618 = vmatpush3.msra.mxu0 %v569_v39  ;;  %v561_v2 = vld [vmem:[#allocation2 + $0x30] sm:$0x1]  ;;  %v633_v6 = vrot.slane %v562_v60, 1  ;;  %v887_v14 = vld [vmem:[#allocation7 + $0x178] sm:$0xff]  ;;  %v884_v22 = vld [vmem:[#allocation7 + $0x160] sm:$0xff] }
  0x75   : > { %2919 = vmatprep.subr.mxu1 %v601_v40  ;;  %2619 = vmatprep.subr.mxu0 %v584_v41  ;;  %v627_v4 = vsel %vm621_vm2, %v625_v57, %v626_v51  ;;  %v624_v8 = vsel %vm621_vm2, %v622_v58, %v623_v59  ;;  %v631_v10 = vrot.slane %v561_v2, 1  ;;  %v871_v15 = vld [vmem:[#allocation7 + $0xf8] sm:$0xff]  ;;  %v854_v21 = vld [vmem:[#allocation7 + $0x70] sm:$0xff]  ;;  %v869_v23 = vld [vmem:[#allocation7 + $0xe8] sm:$0xff] }
  0x76   : > { %2920 = vmatpush3.msra.mxu1 %v601_v40  ;;  %2620 = vmatpush3.msra.mxu0 %v568_v42  ;;  %v634_v13 = vsel %vm621_vm2, %v626_v51, %v633_v6  ;;  %v855_v18 = vld [vmem:[#allocation7 + $0x78] sm:$0xff]  ;;  %v853_v24 = vld [vmem:[#allocation7 + $0x68] sm:$0xff]  ;;  %v868_v26 = vld [vmem:[#allocation7 + $0xe0] sm:$0xff] }
  0x77   : > { %2921 = vmatprep.subr.mxu1 %v600_v43  ;;  %2621 = vmatprep.subr.mxu0 %v583_v45  ;;  %v632_v16 = vsel %vm621_vm2, %v623_v59, %v631_v10  ;;  %v883_v25 = vld [vmem:[#allocation7 + $0x158] sm:$0xff]  ;;  %v852_v27 = vld [vmem:[#allocation7 + $0x60] sm:$0xff]  ;;  %v882_v28 = vld [vmem:[#allocation7 + $0x150] sm:$0xff] }
  0x78   : > { %2922 = vmatpush3.msra.mxu1 %v600_v43  ;;  %2622 = vmatpush3.msra.mxu0 %v567_v46  ;;  %v867_v29 = vld [vmem:[#allocation7 + $0xd8] sm:$0xff]  ;;  %v881_v31 = vld [vmem:[#allocation7 + $0x148] sm:$0xff]  ;;  %v866_v32 = vld [vmem:[#allocation7 + $0xd0] sm:$0xff] }
  0x79   : > { %2923 = vmatprep.subr.mxu1 %v599_v47  ;;  %2623 = vmatprep.subr.mxu0 %v582_v49  ;;  %v851_v30 = vld [vmem:[#allocation7 + $0x58] sm:$0xff]  ;;  %v850_v33 = vld [vmem:[#allocation7 + $0x50] sm:$0xff]  ;;  %v880_v34 = vld [vmem:[#allocation7 + $0x140] sm:$0xff] }
  0x7a   : > { %2924 = vmatpush3.msra.mxu1 %v599_v47  ;;  %2624 = vmatpush3.msra.mxu0 %v566_v50  ;;  %v865_v35 = vld [vmem:[#allocation7 + $0xc8] sm:$0xff]  ;;  %v879_v37 = vld [vmem:[#allocation7 + $0x138] sm:$0xff]  ;;  %v864_v38 = vld [vmem:[#allocation7 + $0xc0] sm:$0xff] }
  0x7b   : > { %2925 = vmatprep.subr.mxu1 %v598_v53  ;;  %2625 = vmatprep.subr.mxu0 %v581_v56  ;;  %v849_v36 = vld [vmem:[#allocation7 + $0x48] sm:$0xff]  ;;  %v848_v39 = vld [vmem:[#allocation7 + $0x40] sm:$0xff]  ;;  %v878_v40 = vld [vmem:[#allocation7 + $0x130] sm:$0xff] }
  0x7c   : > { %2926 = vmatpush3.msra.mxu1 %v598_v53  ;;  %2626 = vmatpush3.msra.mxu0 %v565_v61  ;;  %v863_v41 = vld [vmem:[#allocation7 + $0xb8] sm:$0xff]  ;;  %v877_v43 = vld [vmem:[#allocation7 + $0x128] sm:$0xff]  ;;  %v862_v44 = vld [vmem:[#allocation7 + $0xb0] sm:$0xff] }
  0x7d   : > { %2927 = vmatprep.subr.mxu1 %v597_v62  ;;  %2627 = vmatprep.subr.mxu0 %v580_v3  ;;  %v847_v42 = vld [vmem:[#allocation7 + $0x38] sm:$0xff]  ;;  %v846_v45 = vld [vmem:[#allocation7 + $0x30] sm:$0xff]  ;;  %v876_v46 = vld [vmem:[#allocation7 + $0x120] sm:$0xff] }
  0x7e   : > { %707 = vmatprep.mubr.f32.mxu0 %v627_v4  ;;  %2628 = vmatpush3.msra.mxu0 %v564_v7  ;;  %v861_v47 = vld [vmem:[#allocation7 + $0xa8] sm:$0xff]  ;;  %v875_v49 = vld [vmem:[#allocation7 + $0x118] sm:$0xff]  ;;  %v860_v50 = vld [vmem:[#allocation7 + $0xa0] sm:$0xff] }
  0x7f   : > { %2928 = vmatpush3.msra.mxu1 %v597_v62  ;;  %708 = vmatmul.mubr.f32.vlgmr.msra.gmra.mxu0 %v624_v8  ;;  %v845_v48 = vld [vmem:[#allocation7 + $0x28] sm:$0xff]  ;;  %v844_v51 = vld [vmem:[#allocation7 + $0x20] sm:$0xff]  ;;  %v874_v52 = vld [vmem:[#allocation7 + $0x110] sm:$0xff] }
  0x80   : > { %2929 = vmatprep.subr.mxu1 %v596_v9  ;;  %2931 = vmatprep.mubr.f32.mxu1 %v630_v11  ;;  %v859_v53 = vld [vmem:[#allocation7 + $0x98] sm:$0xff]  ;;  %v873_v55 = vld [vmem:[#allocation7 + $0x108] sm:$0xff]  ;;  %v858_v56 = vld [vmem:[#allocation7 + $0x90] sm:$0xff] }
  0x81   : > { %2930 = vmatpush3.msra.mxu1 %v596_v9  ;;  %712 = vmatprep.mubr.f32.mxu0 %v634_v13  ;;  %v843_v54 = vld [vmem:[#allocation7 + $0x18] sm:$0xff]  ;;  %v842_v57 = vld [vmem:[#allocation7 + $0x10] sm:$0xff]  ;;  %v872_v58 = vld [vmem:[#allocation7 + $0x100] sm:$0xff] }
  0x82   : > { %2932 = vmatmul.mubr.f32.vlgmr.msra.gmra.mxu1 %v636_v12  ;;  %2934 = vmatprep.subr.mxu1 %v887_v14  ;;  %v857_v59 = vld [vmem:[#allocation7 + $0x88] sm:$0xff]  ;;  %v856_v61 = vld [vmem:[#allocation7 + $0x80] sm:$0xff]  ;;  %v2561_v6 = vld [vmem:[#allocation5] ss:$0 sm:$0xff] }
  0x83   : > { %2653 = vmatprep.subr.mxu0 %v871_v15  ;;  %713 = vmatmul.mubr.f32.gmra.mxu0 %v632_v16  ;;  %v841_v60 = vld [vmem:[#allocation7 + $0x8] sm:$0xff]  ;;  %v840_v62 = vld [vmem:[#allocation7] sm:$0xff]  ;;  %v2562_v8 = vld [vmem:[#allocation5 + $0x1] ss:$0 sm:$0xff] }
  0x84   : > { %2935 = vmatpush3.msra.mxu1 %v887_v14  ;;  %2654 = vmatpush3.msra.mxu0 %v855_v18 }
  0x85   : > { %2936 = vmatprep.subr.mxu1 %v886_v17  ;;  %2655 = vmatprep.subr.mxu0 %v870_v20  ;;  %v839_v20 = vld [vmem:[#allocation2 + $0x40] sm:$0x1] }
  0x86   : > { %2937 = vmatpush3.msra.mxu1 %v886_v17  ;;  %2656 = vmatpush3.msra.mxu0 %v854_v21 }
  0x87   : > { %2938 = vmatprep.subr.mxu1 %v885_v19  ;;  %2657 = vmatprep.subr.mxu0 %v869_v23 }
  0x88   : > { %2939 = vmatpush3.msra.mxu1 %v885_v19  ;;  %2658 = vmatpush3.msra.mxu0 %v853_v24 }
  0x89   : > { %2940 = vmatprep.subr.mxu1 %v884_v22  ;;  %2659 = vmatprep.subr.mxu0 %v868_v26 }
  0x8a   : > { %2941 = vmatpush3.msra.mxu1 %v884_v22  ;;  %2660 = vmatpush3.msra.mxu0 %v852_v27 }
  0x8b   : > { %2942 = vmatprep.subr.mxu1 %v883_v25  ;;  %2661 = vmatprep.subr.mxu0 %v867_v29 }
  0x8c   : > { %2943 = vmatpush3.msra.mxu1 %v883_v25  ;;  %2662 = vmatpush3.msra.mxu0 %v851_v30  ;;  %v910_v25 = vrot.slane %v839_v20, 1  ;;  %v1362_v20 = vld [vmem:[%s4091_s7 + $0x58] sm:$0xff] }
  0x8d   : > { %2944 = vmatprep.subr.mxu1 %v882_v28  ;;  %2663 = vmatprep.subr.mxu0 %v866_v32 }
  0x8e   : > { %2945 = vmatpush3.msra.mxu1 %v882_v28  ;;  %2664 = vmatpush3.msra.mxu0 %v850_v33 }
  0x8f   : > { %2946 = vmatprep.subr.mxu1 %v881_v31  ;;  %2665 = vmatprep.subr.mxu0 %v865_v35 }
  0x90   : > { %2947 = vmatpush3.msra.mxu1 %v881_v31  ;;  %2666 = vmatpush3.msra.mxu0 %v849_v36 }
  0x91   : > { %2948 = vmatprep.subr.mxu1 %v880_v34  ;;  %2667 = vmatprep.subr.mxu0 %v864_v38 }
  0x92   : > { %2949 = vmatpush3.msra.mxu1 %v880_v34  ;;  %2668 = vmatpush3.msra.mxu0 %v848_v39 }
  0x93   : > { %2950 = vmatprep.subr.mxu1 %v879_v37  ;;  %2669 = vmatprep.subr.mxu0 %v863_v41 }
  0x94   : > { %2951 = vmatpush3.msra.mxu1 %v879_v37  ;;  %2670 = vmatpush3.msra.mxu0 %v847_v42 }
  0x95   : > { %2952 = vmatprep.subr.mxu1 %v878_v40  ;;  %2671 = vmatprep.subr.mxu0 %v862_v44  ;;  %v1193_v44 = vld [vmem:[#allocation8 + $0x38] sm:$0xff] }
  0x96   : > { %2953 = vmatpush3.msra.mxu1 %v878_v40  ;;  %2672 = vmatpush3.msra.mxu0 %v846_v45  ;;  %v1192_v45 = vld [vmem:[#allocation8 + $0x30] sm:$0xff] }
  0x97   : > { %2954 = vmatprep.subr.mxu1 %v877_v43  ;;  %2673 = vmatprep.subr.mxu0 %v861_v47  ;;  %v1190_v47 = vld [vmem:[#allocation8 + $0x20] sm:$0xff] }
  0x98   : > { %2955 = vmatpush3.msra.mxu1 %v877_v43  ;;  %2674 = vmatpush3.msra.mxu0 %v845_v48  ;;  %v1084_v43 = vld [vmem:[%s4089_s5] sm:$0xff]  ;;  %v1189_v48 = vld [vmem:[#allocation8 + $0x18] sm:$0xff] }
  0x99   : > { %2956 = vmatprep.subr.mxu1 %v876_v46  ;;  %2675 = vmatprep.subr.mxu0 %v860_v50 }
  0x9a   : > { %2957 = vmatpush3.msra.mxu1 %v876_v46  ;;  %2676 = vmatpush3.msra.mxu0 %v844_v51  ;;  %v1191_v46 = vld [vmem:[#allocation8 + $0x28] sm:$0xff] }
  0x9b   : > { %2958 = vmatprep.subr.mxu1 %v875_v49  ;;  %2677 = vmatprep.subr.mxu0 %v859_v53 }
  0x9c   : > { %2959 = vmatpush3.msra.mxu1 %v875_v49  ;;  %2678 = vmatpush3.msra.mxu0 %v843_v54  ;;  %v1188_v49 = vld [vmem:[#allocation8 + $0x10] sm:$0xff] }
  0x9d   : > { %2960 = vmatprep.subr.mxu1 %v874_v52  ;;  %2679 = vmatprep.subr.mxu0 %v858_v56 }
  0x9e   : > { %2961 = vmatpush3.msra.mxu1 %v874_v52  ;;  %2680 = vmatpush3.msra.mxu0 %v842_v57  ;;  %v2563_v57 = vld [vmem:[%s4088_s4] ss:$0 sm:$0xff] }
  0x9f   : > { %2962 = vmatprep.subr.mxu1 %v873_v55  ;;  %2681 = vmatprep.subr.mxu0 %v857_v59 }
  0xa0   : > { %2963 = vmatpush3.msra.mxu1 %v873_v55  ;;  %2682 = vmatpush3.msra.mxu0 %v841_v60 }
  0xa1   : > { %2964 = vmatprep.subr.mxu1 %v872_v58  ;;  %2683 = vmatprep.subr.mxu0 %v856_v61 }
  0xa2   : > { %2965 = vmatpush3.msra.mxu1 %v872_v58  ;;  %2684 = vmatpush3.msra.mxu0 %v840_v62  ;;  %v2564_v62 = vld [vmem:[%s4088_s4 + $0x1] ss:$0 sm:$0xff] }
  0xa3   : > { %2979 = vmatprep.subr.mxu0 %v1193_v44 }
 0x13f   : > { %v2629_v63 = vpop.f32.mrf.mxu0 }
 0x141   : > { %v2630_v1 = vpop.f32.mrf.mxu0 }
 0x142   : > { %v2933_v2 = vpop.f32.mrf.mxu1  ;;  %v2631_v3 = vadd.f32 %v2630_v1, %v2629_v63 }
 0x143   : > { %v2632_v4 = vpop.f32.mrf.mxu0 }
 0x144   : > { %v784_v5 = vpop.f32.mrf.mxu1 }
 0x145   : > { %v785_v7 = vadd.f32 %v2631_v3, %v784_v5  ;;  %v2633_v9 = vpop.f32.mrf.mxu0  ;;  %v1085_v5 = vld [vmem:[%s4089_s5 + $0x8] sm:$0xff] }
 0x146   : > { %v2634_v11 = vadd.f32 %v2633_v9, %v2632_v4  ;;  %v1186_v9 = vld [vmem:[#allocation8] sm:$0xff] }
 0x147   : > { %v798_v10 = vmul.f32 %v2561_v6, %v785_v7  ;;  %v1087_v7 = vld [vmem:[%s4089_s5 + $0x18] sm:$0xff] }
 0x148   : > { %v790_v13 = vadd.f32 %v2933_v2, %v2634_v11  ;;  %v1398_v11 = vld [vmem:[%s4091_s7 + $0x178] sm:$0xff] }
 0x149   : > { %v805_v12 = vadd.f32 %v2562_v8, %v798_v10  ;;  %v1382_v10 = vld [vmem:[%s4091_s7 + $0xf8] sm:$0xff] }
 0x14a   : > { %v799_v16 = vmul.f32 %v2561_v6, %v790_v13  ;;  %v1086_v6 = vld [vmem:[%s4089_s5 + $0x10] sm:$0xff] }
 0x14b   : > { %v809_v14 = vrot.slane %v805_v12, 6  ;;  %v819_v15 = vrot.slane %v805_v12, 7  ;;  %828 = vst [vmem:[#allocation2 + $0x10] sm:$0xff] %v805_v12  ;;  %v1366_v12 = vld [vmem:[%s4091_s7 + $0x78] sm:$0xff]  ;;  %v1381_v13 = vld [vmem:[%s4091_s7 + $0xf0] sm:$0xff] }
 0x14c   : > { %v806_v17 = vadd.f32 %v2562_v8, %v799_v16  ;;  %v1187_v8 = vld [vmem:[#allocation8 + $0x8] sm:$0xff] }
 0x14d   : > { %815 = vst [vmem:[#allocation2] sm:$0xfc] %v809_v14  ;;  %825 = vst [vmem:[#allocation2 + $0x8] sm:$0xfe] %v819_v15  ;;  %v1364_v16 = vld [vmem:[%s4091_s7 + $0x68] sm:$0xff] }
 0x14e   : > { %v810_v18 = vrot.slane %v806_v17, 6  ;;  %v820_v19 = vrot.slane %v806_v17, 7  ;;  %v904_v24 = vrot.slane %v806_v17, 1  ;;  %v1379_v17 = vld [vmem:[%s4091_s7 + $0xe0] sm:$0xff] }
 0x150   : > { %817 = vst [vmem:[#allocation2 + $0x30] sm:$0x3] %v810_v18  ;;  %v821_v21 = vsel %vm542_vm0, %v819_v15, %v820_v19  ;;  %827 = vst [vmem:[#allocation2 + $0x38] sm:$0x1] %v820_v19  ;;  %v811_v22 = vsel %vm531_vm1, %v809_v14, %v810_v18  ;;  %v911_v34 = vsel %vm621_vm2, %v904_v24, %v910_v25  ;;  %v1365_v14 = vld [vmem:[%s4091_s7 + $0x70] sm:$0xff]  ;;  %v1380_v15 = vld [vmem:[%s4091_s7 + $0xe8] sm:$0xff] }
 0x151   : > { %v901_v28 = vrot.slane %v821_v21, 1  ;;  %v898_v33 = vrot.slane %v811_v22, 1  ;;  %v1363_v18 = vld [vmem:[%s4091_s7 + $0x60] sm:$0xff]  ;;  %v1378_v19 = vld [vmem:[%s4091_s7 + $0xd8] sm:$0xff]  ;;  %v1377_v21 = vld [vmem:[%s4091_s7 + $0xd0] sm:$0xff] }
 0x152   : > { %v833_v23 = vld [vmem:[#allocation2 + $0x10] sm:$0xfe] }
 0x153   : > { %v903_v26 = vrot.slane %v833_v23, 1  ;;  %v1361_v22 = vld [vmem:[%s4091_s7 + $0x50] sm:$0xff]  ;;  %v1376_v23 = vld [vmem:[%s4091_s7 + $0xc8] sm:$0xff] }
 0x154   : > { %v832_v27 = vld [vmem:[#allocation2 + $0x8] sm:$0xfe]  ;;  %v831_v29 = vld [vmem:[#allocation2] sm:$0xfe] }
 0x155   : > { %v905_v30 = vsel %vm621_vm2, %v903_v26, %v904_v24  ;;  %v900_v31 = vrot.slane %v832_v27, 1  ;;  %v897_v32 = vrot.slane %v831_v29, 1  ;;  %1313 = vst [vmem:[#allocation2 + $0x1] sm:$0x1] %v3391_v0  ;;  %v1360_v24 = vld [vmem:[%s4091_s7 + $0x48] sm:$0xff]  ;;  %v1397_v27 = vld [vmem:[%s4091_s7 + $0x170] sm:$0xff] }
 0x156   : > { %2966 = vmatprep.mubr.f32.mxu1 %v905_v30  ;;  %v1396_v29 = vld [vmem:[%s4091_s7 + $0x168] sm:$0xff] }
 0x157   : > { %2967 = vmatmul.mubr.f32.vlgmr.msra.gmra.mxu1 %v911_v34  ;;  %v902_v35 = vsel %vm621_vm2, %v900_v31, %v901_v28  ;;  %v899_v36 = vsel %vm621_vm2, %v897_v32, %v898_v33  ;;  %v838_v37 = vld [vmem:[#allocation2 + $0x38] sm:$0x1]  ;;  %v837_v38 = vld [vmem:[#allocation2 + $0x30] sm:$0x1]  ;;  %v1395_v31 = vld [vmem:[%s4091_s7 + $0x160] sm:$0xff] }
 0x158   : > { %982 = vmatprep.mubr.f32.mxu0 %v902_v35  ;;  %v908_v39 = vrot.slane %v838_v37, 1  ;;  %v906_v40 = vrot.slane %v837_v38, 1  ;;  %2973 = vmatprep.mubr.msk.f32.mxu1 %vm1088_vm3, %v1084_v43  ;;  %v1394_v32 = vld [vmem:[%s4091_s7 + $0x158] sm:$0xff]  ;;  %v1392_v34 = vld [vmem:[%s4091_s7 + $0x148] sm:$0xff]  ;;  %v1391_v35 = vld [vmem:[%s4091_s7 + $0x140] sm:$0xff] }
 0x159   : > { %983 = vmatmul.mubr.f32.vlgmr.msra.gmra.mxu0 %v899_v36  ;;  %v1375_v36 = vld [vmem:[%s4091_s7 + $0xc0] sm:$0xff]  ;;  %v1390_v37 = vld [vmem:[%s4091_s7 + $0x138] sm:$0xff]  ;;  %v1388_v43 = vld [vmem:[%s4091_s7 + $0x128] sm:$0xff] }
 0x15a   : > { %v909_v41 = vsel %vm621_vm2, %v901_v28, %v908_v39  ;;  %v907_v42 = vsel %vm621_vm2, %v898_v33, %v906_v40  ;;  %2980 = vmatpush3.msra.mxu0 %v1193_v44  ;;  %v1393_v33 = vld [vmem:[%s4091_s7 + $0x150] sm:$0xff]  ;;  %v1359_v38 = vld [vmem:[%s4091_s7 + $0x40] sm:$0xff]  ;;  %v1374_v39 = vld [vmem:[%s4091_s7 + $0xb8] sm:$0xff] }
 0x15b   : > { %987 = vmatprep.mubr.f32.mxu0 %v909_v41  ;;  %2981 = vmatprep.subr.mxu0 %v1192_v45  ;;  %v1389_v40 = vld [vmem:[%s4091_s7 + $0x130] sm:$0xff]  ;;  %v1358_v41 = vld [vmem:[%s4091_s7 + $0x38] sm:$0xff] }
 0x15c   : > { %2982 = vmatpush3.msra.mxu0 %v1192_v45  ;;  %v1357_v44 = vld [vmem:[%s4091_s7 + $0x30] sm:$0xff]  ;;  %v1372_v45 = vld [vmem:[%s4091_s7 + $0xa8] sm:$0xff] }
 0x15d   : > { %988 = vmatmul.mubr.f32.gmra.mxu0 %v907_v42  ;;  %2983 = vmatprep.subr.mxu0 %v1191_v46  ;;  %v1373_v42 = vld [vmem:[%s4091_s7 + $0xb0] sm:$0xff] }
 0x15e   : > { %2984 = vmatpush3.msra.mxu0 %v1191_v46  ;;  %v1387_v46 = vld [vmem:[%s4091_s7 + $0x120] sm:$0xff] }
 0x15f   : > { %2985 = vmatprep.subr.mxu0 %v1190_v47 }
 0x160   : > { %2986 = vmatpush3.msra.mxu0 %v1190_v47  ;;  %v1356_v47 = vld [vmem:[%s4091_s7 + $0x28] sm:$0xff] }
 0x161   : > { %2987 = vmatprep.subr.mxu0 %v1189_v48 }
 0x162   : > { %2988 = vmatpush3.msra.mxu0 %v1189_v48  ;;  %v1371_v48 = vld [vmem:[%s4091_s7 + $0xa0] sm:$0xff] }
 0x163   : > { %2989 = vmatprep.subr.mxu0 %v1188_v49 }
 0x164   : > { %2990 = vmatpush3.msra.mxu0 %v1188_v49  ;;  %v1386_v49 = vld [vmem:[%s4091_s7 + $0x118] sm:$0xff] }
 0x165   : > { %2991 = vmatprep.subr.mxu0 %v1187_v8 }
 0x166   : > { %2992 = vmatpush3.msra.mxu0 %v1187_v8 }
 0x167   : > { %2993 = vmatprep.subr.mxu0 %v1186_v9 }
 0x168   : > { %2994 = vmatpush3.msra.mxu0 %v1186_v9 }
 0x169   : > { %3001 = vmatprep.subr.mxu0 %v1398_v11 }
 0x217   : > { %v2968_v50 = vpop.f32.mrf.mxu1 }
 0x219   : > { %v2685_v51 = vpop.f32.mrf.mxu0  ;;  %v1059_v54 = vpop.f32.mrf.mxu1 }
 0x21b   : > { %v2686_v52 = vpop.f32.mrf.mxu0 }
 0x21c   : > { %v2687_v53 = vadd.f32 %v2686_v52, %v2685_v51  ;;  %v1370_v51 = vld [vmem:[%s4091_s7 + $0x98] sm:$0xff] }
 0x21d   : > { %v2688_v55 = vpop.f32.mrf.mxu0  ;;  %v1354_v52 = vld [vmem:[%s4091_s7 + $0x18] sm:$0xff] }
 0x21e   : > { %v1060_v56 = vadd.f32 %v2687_v53, %v1059_v54  ;;  %v1369_v53 = vld [vmem:[%s4091_s7 + $0x90] sm:$0xff] }
 0x21f   : > { %v2689_v58 = vpop.f32.mrf.mxu0  ;;  %v1385_v54 = vld [vmem:[%s4091_s7 + $0x110] sm:$0xff] }
 0x220   : > { %v2690_v59 = vadd.f32 %v2689_v58, %v2688_v55  ;;  %v1073_v60 = vmul.f32 %v2563_v57, %v1060_v56  ;;  %v1353_v55 = vld [vmem:[%s4091_s7 + $0x10] sm:$0xff]  ;;  %v1384_v56 = vld [vmem:[%s4091_s7 + $0x108] sm:$0xff] }
 0x221   : > { %v1352_v58 = vld [vmem:[%s4091_s7 + $0x8] sm:$0xff] }
 0x222   : > { %v1065_v61 = vadd.f32 %v2968_v50, %v2690_v59  ;;  %v1080_v2 = vadd.f32 %v2564_v62, %v1073_v60  ;;  %v1355_v50 = vld [vmem:[%s4091_s7 + $0x20] sm:$0xff] }
 0x223   : > { %v1367_v59 = vld [vmem:[%s4091_s7 + $0x80] sm:$0xff] }
 0x224   : > { %v1074_v63 = vmul.f32 %v2563_v57, %v1065_v61  ;;  %v1082_v4 = vmax.f32 %v1080_v2, 0.0  ;;  %v1368_v57 = vld [vmem:[%s4091_s7 + $0x88] sm:$0xff]  ;;  %v1383_v60 = vld [vmem:[%s4091_s7 + $0x100] sm:$0xff] }
 0x225   : > { %v1351_v61 = vld [vmem:[%s4091_s7] sm:$0xff] }
 0x226   : > { %v1081_v1 = vadd.f32 %v2564_v62, %v1074_v63 }
 0x228   : > { %v1083_v3 = vmax.f32 %v1081_v1, 0.0 }
 0x22a   : > { %2969 = vmatprep.subr.mxu1 %v1083_v3 }
 0x22b   : > { %2970 = vmatpush3.msra.mxu1 %v1083_v3 }
 0x22c   : > { %2971 = vmatprep.subr.mxu1 %v1082_v4 }
 0x22d   : > { %2972 = vmatpush3.msra.mxu1 %v1082_v4 }
 0x22e   : > { %2974 = vmatmul.mubr.msk.f32.vlgmr.msra.gmra.mxu1 %vm1088_vm3, %v1085_v5  ;;  %2727 = vmatprep.subr.mxu1 %v1382_v10 }
 0x22f   : > { %2976 = vmatprep.mubr.msk.f32.mxu1 %vm1088_vm3, %v1086_v6  ;;  %2728 = vmatpush3.msra.mxu1 %v1366_v12 }
 0x230   : > { %2729 = vmatprep.subr.mxu1 %v1381_v13 }
 0x231   : > { %2730 = vmatpush3.msra.mxu1 %v1365_v14 }
 0x232   : > { %2977 = vmatmul.mubr.msk.f32.gmra.mxu1 %vm1088_vm3, %v1087_v7  ;;  %2731 = vmatprep.subr.mxu1 %v1380_v15 }
 0x233   : > { %2732 = vmatpush3.msra.mxu1 %v1364_v16 }
 0x234   : > { %2733 = vmatprep.subr.mxu1 %v1379_v17 }
 0x235   : > { %2734 = vmatpush3.msra.mxu1 %v1363_v18 }
 0x236   : > { %2735 = vmatprep.subr.mxu1 %v1378_v19  ;;  %v1350_v19 = vld [vmem:[#allocation2 + $0x70] sm:$0x1] }
 0x237   : > { %2736 = vmatpush3.msra.mxu1 %v1362_v20 }
 0x238   : > { %2737 = vmatprep.subr.mxu1 %v1377_v21 }
 0x239   : > { %2738 = vmatpush3.msra.mxu1 %v1361_v22 }
 0x23a   : > { %2739 = vmatprep.subr.mxu1 %v1376_v23 }
 0x23b   : > { %2740 = vmatpush3.msra.mxu1 %v1360_v24 }
 0x23c   : > { %2741 = vmatprep.subr.mxu1 %v1375_v36 }
 0x23d   : > { %2742 = vmatpush3.msra.mxu1 %v1359_v38 }
 0x23e   : > { %2743 = vmatprep.subr.mxu1 %v1374_v39 }
 0x23f   : > { %2744 = vmatpush3.msra.mxu1 %v1358_v41 }
 0x240   : > { %2745 = vmatprep.subr.mxu1 %v1373_v42 }
 0x241   : > { %2746 = vmatpush3.msra.mxu1 %v1357_v44 }
 0x242   : > { %2747 = vmatprep.subr.mxu1 %v1372_v45 }
 0x243   : > { %2748 = vmatpush3.msra.mxu1 %v1356_v47 }
 0x244   : > { %2749 = vmatprep.subr.mxu1 %v1371_v48 }
 0x245   : > { %2750 = vmatpush3.msra.mxu1 %v1355_v50  ;;  %v1790_v50 = vld [vmem:[#allocation11 + $0x38] sm:$0xff] }
 0x246   : > { %2751 = vmatprep.subr.mxu1 %v1370_v51  ;;  %v1789_v51 = vld [vmem:[#allocation11 + $0x30] sm:$0xff] }
 0x247   : > { %2752 = vmatpush3.msra.mxu1 %v1354_v52  ;;  %v1788_v52 = vld [vmem:[#allocation11 + $0x28] sm:$0xff] }
 0x248   : > { %2753 = vmatprep.subr.mxu1 %v1369_v53  ;;  %v1787_v53 = vld [vmem:[#allocation11 + $0x20] sm:$0xff] }
 0x249   : > { %2754 = vmatpush3.msra.mxu1 %v1353_v55  ;;  %v1785_v55 = vld [vmem:[#allocation11 + $0x10] sm:$0xff] }
 0x24a   : > { %2755 = vmatprep.subr.mxu1 %v1368_v57 }
 0x24b   : > { %2756 = vmatpush3.msra.mxu1 %v1352_v58 }
 0x24c   : > { %2757 = vmatprep.subr.mxu1 %v1367_v59 }
 0x24d   : > { %2758 = vmatpush3.msra.mxu1 %v1351_v61 }
 0x2ee   : > { %v2975_v25 = vpop.f32.mrf.mxu1 }
 0x2f0   : > { %v1167_v26 = vpop.f32.mrf.mxu1 }
 0x2f1   : > { %2995 = vmatprep.mubr.msk.f32.mxu0 %vm1194_vm4, %v1167_v26 }
 0x2f2   : > { %v2978_v28 = vpop.f32.mrf.mxu1  ;;  %2996 = vmatmul.mubr.msk.f32.vlgmr.msra.gmra.mxu0 %vm1194_vm4, %v2975_v25 }
 0x2f3   : > { %3002 = vmatpush3.msra.mxu0 %v1398_v11 }
 0x2f4   : > { %v1177_v30 = vpop.f32.mrf.mxu1  ;;  %3003 = vmatprep.subr.mxu0 %v1397_v27 }
 0x2f5   : > { %2998 = vmatprep.mubr.msk.f32.mxu0 %vm1194_vm4, %v1177_v30  ;;  %3004 = vmatpush3.msra.mxu0 %v1397_v27 }
 0x2f6   : > { %2999 = vmatmul.mubr.msk.f32.gmra.mxu0 %vm1194_vm4, %v2978_v28  ;;  %3005 = vmatprep.subr.mxu0 %v1396_v29 }
 0x2f7   : > { %3006 = vmatpush3.msra.mxu0 %v1396_v29 }
 0x2f8   : > { %3007 = vmatprep.subr.mxu0 %v1395_v31 }
 0x2f9   : > { %3008 = vmatpush3.msra.mxu0 %v1395_v31  ;;  %v1439_v31 = vrot.slane %v1350_v19, 1 }
 0x2fa   : > { %3009 = vmatprep.subr.mxu0 %v1394_v32 }
 0x2fb   : > { %3010 = vmatpush3.msra.mxu0 %v1394_v32 }
 0x2fc   : > { %3011 = vmatprep.subr.mxu0 %v1393_v33 }
 0x2fd   : > { %3012 = vmatpush3.msra.mxu0 %v1393_v33 }
 0x2fe   : > { %3013 = vmatprep.subr.mxu0 %v1392_v34 }
 0x2ff   : > { %3014 = vmatpush3.msra.mxu0 %v1392_v34 }
 0x300   : > { %3015 = vmatprep.subr.mxu0 %v1391_v35 }
 0x301   : > { %3016 = vmatpush3.msra.mxu0 %v1391_v35 }
 0x302   : > { %3017 = vmatprep.subr.mxu0 %v1390_v37 }
 0x303   : > { %3018 = vmatpush3.msra.mxu0 %v1390_v37 }
 0x304   : > { %3019 = vmatprep.subr.mxu0 %v1389_v40 }
 0x305   : > { %3020 = vmatpush3.msra.mxu0 %v1389_v40 }
 0x306   : > { %3021 = vmatprep.subr.mxu0 %v1388_v43 }
 0x307   : > { %3022 = vmatpush3.msra.mxu0 %v1388_v43 }
 0x308   : > { %3023 = vmatprep.subr.mxu0 %v1387_v46 }
 0x309   : > { %3024 = vmatpush3.msra.mxu0 %v1387_v46 }
 0x30a   : > { %3025 = vmatprep.subr.mxu0 %v1386_v49 }
 0x30b   : > { %3026 = vmatpush3.msra.mxu0 %v1386_v49  ;;  %v1645_v49 = vld [vmem:[#allocation10] sm:$0xff] }
 0x30c   : > { %3027 = vmatprep.subr.mxu0 %v1385_v54 }
 0x30d   : > { %3028 = vmatpush3.msra.mxu0 %v1385_v54  ;;  %v1786_v54 = vld [vmem:[#allocation11 + $0x18] sm:$0xff] }
 0x30e   : > { %3029 = vmatprep.subr.mxu0 %v1384_v56 }
 0x30f   : > { %3030 = vmatpush3.msra.mxu0 %v1384_v56 }
 0x310   : > { %3031 = vmatprep.subr.mxu0 %v1383_v60 }
 0x311   : > { %3032 = vmatpush3.msra.mxu0 %v1383_v60 }
 0x312   : > { %3059 = vmatprep.subr.mxu0 %v1790_v50 }
 0x3b2   : > { %v2997_v62 = vpop.f32.mrf.mxu0 }
 0x3b3   : > { %v1297_v7 = vrot.slane %v2997_v62, 6  ;;  %v1315_v8 = vrot.slane %v2997_v62, 7  ;;  %v1421_v17 = vrot.slane %v2997_v62, 1 }
 0x3b4   : > { %v1273_v63 = vpop.f32.mrf.mxu0 }
 0x3b5   : > { %v1296_v1 = vrot.slane %v1273_v63, 6  ;;  %v1314_v2 = vrot.slane %v1273_v63, 7  ;;  %1331 = vst [vmem:[#allocation2 + $0x10] sm:$0xff] %v1273_v63 }
 0x3b6   : > { %v3000_v3 = vpop.f32.mrf.mxu0 }
 0x3b7   : > { %1308 = vst [vmem:[#allocation2] sm:$0xfc] %v1296_v1  ;;  %1326 = vst [vmem:[#allocation2 + $0x8] sm:$0xfe] %v1314_v2  ;;  %v1301_v4 = vrot.slane %v3000_v3, 6  ;;  %v1319_v5 = vrot.slane %v3000_v3, 7  ;;  %v1298_v11 = vsel %vm531_vm1, %v1296_v1, %v1297_v7  ;;  %v1316_v12 = vsel %vm542_vm0, %v1314_v2, %v1315_v8 }
 0x3b8   : > { %v1283_v6 = vpop.f32.mrf.mxu0  ;;  %v1433_v18 = vrot.slane %v3000_v3, 1  ;;  %v1418_v22 = vrot.slane %v1316_v12, 1  ;;  %v1415_v24 = vrot.slane %v1298_v11, 1  ;;  %v2573_v11 = vld [vmem:[%s4092_s8] ss:$0 sm:$0xff] }
 0x3b9   : > { %1312 = vst [vmem:[#allocation2 + $0x60] sm:$0x3] %v1301_v4  ;;  %1330 = vst [vmem:[#allocation2 + $0x68] sm:$0x1] %v1319_v5  ;;  %v1317_v9 = vrot.slane %v1283_v6, 7  ;;  %v1299_v10 = vrot.slane %v1283_v6, 6 }
 0x3ba   : > { %v1427_v15 = vrot.slane %v1283_v6, 1  ;;  %v1440_v38 = vsel %vm621_vm2, %v1433_v18, %v1439_v31  ;;  %v1650_v31 = vld [vmem:[#allocation10 + $0x28] sm:$0xff] }
 0x3bb   : > { %v1318_v13 = vsel %vm542_vm0, %v1315_v8, %v1317_v9  ;;  %v1300_v20 = vsel %vm531_vm1, %v1297_v7, %v1299_v10  ;;  %v1320_v29 = vsel %vm542_vm0, %v1317_v9, %v1319_v5  ;;  %v1302_v36 = vsel %vm531_vm1, %v1299_v10, %v1301_v4 }
 0x3bc   : > { %v1338_v14 = vld [vmem:[#allocation2 + $0x10] sm:$0xfe]  ;;  %v1425_v28 = vrot.slane %v1318_v13, 1  ;;  %v1428_v30 = vsel %vm621_vm2, %v1421_v17, %v1427_v15  ;;  %v1434_v34 = vsel %vm621_vm2, %v1427_v15, %v1433_v18  ;;  %v1423_v35 = vrot.slane %v1300_v20, 1 }
 0x3bd   : > { %v1420_v16 = vrot.slane %v1338_v14, 1  ;;  %v1431_v37 = vrot.slane %v1320_v29, 1  ;;  %v1429_v41 = vrot.slane %v1302_v36, 1  ;;  %v1648_v29 = vld [vmem:[#allocation10 + $0x18] sm:$0xff] }
 0x3be   : > { %v1337_v21 = vld [vmem:[#allocation2 + $0x8] sm:$0xfe]  ;;  %v1336_v23 = vld [vmem:[#allocation2] sm:$0xfe]  ;;  %v1424_v40 = vsel %vm621_vm2, %v1415_v24, %v1423_v35  ;;  %v2062_v36 = vld [vmem:[%s4095_s11 + $0xf8] sm:$0xff] }
 0x3bf   : > { %v1422_v25 = vsel %vm621_vm2, %v1420_v16, %v1421_v17  ;;  %v1417_v26 = vrot.slane %v1337_v21, 1  ;;  %v1414_v27 = vrot.slane %v1336_v23, 1  ;;  %1961 = vst [vmem:[#allocation2 + $0x1] sm:$0x1] %v3391_v0  ;;  %v1426_v0 = vsel %vm621_vm2, %v1418_v22, %v1425_v28  ;;  %v2574_v17 = vld [vmem:[%s4092_s8 + $0x1] ss:$0 sm:$0xff] }
 0x3c0   : > { %3033 = vmatprep.mubr.f32.mxu0 %v1422_v25  ;;  %v1349_v39 = vld [vmem:[#allocation2 + $0x68] sm:$0x1]  ;;  %v1432_v42 = vsel %vm621_vm2, %v1425_v28, %v1431_v37  ;;  %v1348_v44 = vld [vmem:[#allocation2 + $0x60] sm:$0x1]  ;;  %v1430_v45 = vsel %vm621_vm2, %v1423_v35, %v1429_v41  ;;  %v1647_v28 = vld [vmem:[#allocation10 + $0x10] sm:$0xff] }
 0x3c1   : > { %v1419_v32 = vsel %vm621_vm2, %v1417_v26, %v1418_v22  ;;  %v1416_v33 = vsel %vm621_vm2, %v1414_v27, %v1415_v24  ;;  %3034 = vmatmul.mubr.f32.vlgmr.msra.gmra.mxu0 %v1428_v30  ;;  %v1437_v43 = vrot.slane %v1349_v39, 1  ;;  %v1435_v46 = vrot.slane %v1348_v44, 1  ;;  %v1646_v27 = vld [vmem:[#allocation10 + $0x8] sm:$0xff]  ;;  %v1649_v30 = vld [vmem:[#allocation10 + $0x20] sm:$0xff]  ;;  %v2045_v39 = vld [vmem:[%s4095_s11 + $0x70] sm:$0xff] }
 0x3c2   : > { %1517 = vmatprep.mubr.f32.mxu1 %v1419_v32  ;;  %3036 = vmatprep.mubr.f32.mxu0 %v1434_v34  ;;  %v1651_v32 = vld [vmem:[#allocation10 + $0x30] sm:$0xff]  ;;  %v1784_v34 = vld [vmem:[#allocation11 + $0x8] sm:$0xff]  ;;  %v1783_v35 = vld [vmem:[#allocation11] sm:$0xff] }
 0x3c3   : > { %1518 = vmatmul.mubr.f32.vlgmr.msra.gmra.mxu1 %v1416_v33  ;;  %v1438_v47 = vsel %vm621_vm2, %v1431_v37, %v1437_v43  ;;  %v1436_v48 = vsel %vm621_vm2, %v1429_v41, %v1435_v46  ;;  %3060 = vmatpush3.msra.mxu0 %v1790_v50  ;;  %v1652_v33 = vld [vmem:[#allocation10 + $0x38] sm:$0xff]  ;;  %v2044_v41 = vld [vmem:[%s4095_s11 + $0x68] sm:$0xff]  ;;  %v2043_v43 = vld [vmem:[%s4095_s11 + $0x60] sm:$0xff] }
 0x3c4   : > { %1522 = vmatprep.mubr.f32.mxu1 %v1426_v0  ;;  %3061 = vmatprep.subr.mxu0 %v1789_v51  ;;  %v2078_v0 = vld [vmem:[%s4095_s11 + $0x178] sm:$0xff]  ;;  %v2057_v46 = vld [vmem:[%s4095_s11 + $0xd0] sm:$0xff] }
 0x3c5   : > { %3037 = vmatmul.mubr.f32.gmra.mxu0 %v1440_v38  ;;  %v2046_v37 = vld [vmem:[%s4095_s11 + $0x78] sm:$0xff]  ;;  %v2061_v38 = vld [vmem:[%s4095_s11 + $0xf0] sm:$0xff] }
 0x3c6   : > { %3062 = vmatpush3.msra.mxu0 %v1789_v51  ;;  %v2058_v44 = vld [vmem:[%s4095_s11 + $0xd8] sm:$0xff] }
 0x3c7   : > { %1523 = vmatmul.mubr.f32.gmra.mxu1 %v1424_v40  ;;  %3063 = vmatprep.subr.mxu0 %v1788_v52  ;;  %v2060_v40 = vld [vmem:[%s4095_s11 + $0xe8] sm:$0xff] }
 0x3c8   : > { %1527 = vmatprep.mubr.f32.mxu1 %v1432_v42  ;;  %3064 = vmatpush3.msra.mxu0 %v1788_v52  ;;  %v2059_v42 = vld [vmem:[%s4095_s11 + $0xe0] sm:$0xff]  ;;  %v2077_v52 = vld [vmem:[%s4095_s11 + $0x170] sm:$0xff] }
 0x3c9   : > { %3065 = vmatprep.subr.mxu0 %v1787_v53 }
 0x3ca   : > { %3066 = vmatpush3.msra.mxu0 %v1787_v53 }
 0x3cb   : > { %1528 = vmatmul.mubr.f32.gmra.mxu1 %v1430_v45  ;;  %3067 = vmatprep.subr.mxu0 %v1786_v54  ;;  %v2042_v45 = vld [vmem:[%s4095_s11 + $0x58] sm:$0xff] }
 0x3cc   : > { %1532 = vmatprep.mubr.f32.mxu1 %v1438_v47  ;;  %3068 = vmatpush3.msra.mxu0 %v1786_v54  ;;  %v2041_v47 = vld [vmem:[%s4095_s11 + $0x50] sm:$0xff]  ;;  %v2076_v54 = vld [vmem:[%s4095_s11 + $0x168] sm:$0xff] }
 0x3cd   : > { %3069 = vmatprep.subr.mxu0 %v1785_v55 }
 0x3ce   : > { %3070 = vmatpush3.msra.mxu0 %v1785_v55 }
 0x3cf   : > { %1533 = vmatmul.mubr.f32.gmra.mxu1 %v1436_v48  ;;  %3071 = vmatprep.subr.mxu0 %v1784_v34  ;;  %v2056_v48 = vld [vmem:[%s4095_s11 + $0xc8] sm:$0xff] }
 0x3d0   : > { %3047 = vmatprep.mubr.msk.f32.mxu1 %vm1653_vm5, %v1645_v49  ;;  %3072 = vmatpush3.msra.mxu0 %v1784_v34  ;;  %v2040_v49 = vld [vmem:[%s4095_s11 + $0x48] sm:$0xff] }
 0x3d1   : > { %3073 = vmatprep.subr.mxu0 %v1783_v35 }
 0x3d2   : > { %3074 = vmatpush3.msra.mxu0 %v1783_v35 }
 0x3d3   : > { %3087 = vmatprep.subr.mxu0 %v2078_v0 }
 0x481   : > { %v3035_v57 = vpop.f32.mrf.mxu0 }
 0x483   : > { %v2759_v56 = vpop.f32.mrf.mxu1  ;;  %v1604_v59 = vpop.f32.mrf.mxu0 }
 0x485   : > { %v2760_v58 = vpop.f32.mrf.mxu1  ;;  %v3038_v62 = vpop.f32.mrf.mxu0 }
 0x486   : > { %v2761_v6 = vadd.f32 %v2760_v58, %v2759_v56  ;;  %v2075_v56 = vld [vmem:[%s4095_s11 + $0x160] sm:$0xff]  ;;  %v2074_v58 = vld [vmem:[%s4095_s11 + $0x158] sm:$0xff] }
 0x487   : > { %v2762_v60 = vpop.f32.mrf.mxu1  ;;  %v1614_v4 = vpop.f32.mrf.mxu0 }
 0x488   : > { %v1605_v12 = vadd.f32 %v2761_v6, %v1604_v59  ;;  %v2069_v6 = vld [vmem:[%s4095_s11 + $0x130] sm:$0xff] }
 0x489   : > { %v2763_v61 = vpop.f32.mrf.mxu1 }
 0x48a   : > { %v2764_v2 = vadd.f32 %v2763_v61, %v2762_v60  ;;  %v1628_v18 = vmul.f32 %v2573_v11, %v1605_v12  ;;  %v2073_v60 = vld [vmem:[%s4095_s11 + $0x150] sm:$0xff]  ;;  %v2067_v12 = vld [vmem:[%s4095_s11 + $0x120] sm:$0xff] }
 0x48b   : > { %v2765_v63 = vpop.f32.mrf.mxu1 }
 0x48c   : > { %v1610_v9 = vadd.f32 %v3035_v57, %v2764_v2  ;;  %v1637_v24 = vadd.f32 %v2574_v17, %v1628_v18  ;;  %v2055_v2 = vld [vmem:[%s4095_s11 + $0xc0] sm:$0xff]  ;;  %v2065_v18 = vld [vmem:[%s4095_s11 + $0x110] sm:$0xff] }
 0x48d   : > { %v2766_v1 = vpop.f32.mrf.mxu1 }
 0x48e   : > { %v2767_v3 = vadd.f32 %v2766_v1, %v2765_v63  ;;  %v1629_v15 = vmul.f32 %v2573_v11, %v1610_v9  ;;  %v1641_v26 = vmax.f32 %v1637_v24, 0.0  ;;  %v2071_v1 = vld [vmem:[%s4095_s11 + $0x140] sm:$0xff]  ;;  %v2068_v9 = vld [vmem:[%s4095_s11 + $0x128] sm:$0xff] }
 0x48f   : > { %v2768_v5 = vpop.f32.mrf.mxu1  ;;  %v2063_v24 = vld [vmem:[%s4095_s11 + $0x100] sm:$0xff] }
 0x490   : > { %v1615_v7 = vadd.f32 %v2767_v3, %v1614_v4  ;;  %v1638_v22 = vadd.f32 %v2574_v17, %v1629_v15  ;;  %v2070_v3 = vld [vmem:[%s4095_s11 + $0x138] sm:$0xff]  ;;  %v2039_v4 = vld [vmem:[%s4095_s11 + $0x40] sm:$0xff] }
 0x491   : > { %v2769_v8 = vpop.f32.mrf.mxu1  ;;  %v2066_v15 = vld [vmem:[%s4095_s11 + $0x118] sm:$0xff] }
 0x492   : > { %v2770_v10 = vadd.f32 %v2769_v8, %v2768_v5  ;;  %v1630_v13 = vmul.f32 %v2573_v11, %v1615_v7  ;;  %v1642_v25 = vmax.f32 %v1638_v22, 0.0  ;;  %v2054_v5 = vld [vmem:[%s4095_s11 + $0xb8] sm:$0xff]  ;;  %v2053_v8 = vld [vmem:[%s4095_s11 + $0xb0] sm:$0xff] }
 0x493   : > { %v2038_v7 = vld [vmem:[%s4095_s11 + $0x38] sm:$0xff]  ;;  %v2033_v22 = vld [vmem:[%s4095_s11 + $0x10] sm:$0xff] }
 0x494   : > { %v1620_v14 = vadd.f32 %v3038_v62, %v2770_v10  ;;  %v1639_v20 = vadd.f32 %v2574_v17, %v1630_v13  ;;  %v2072_v62 = vld [vmem:[%s4095_s11 + $0x148] sm:$0xff]  ;;  %v2037_v10 = vld [vmem:[%s4095_s11 + $0x30] sm:$0xff] }
 0x495   : > { %v2036_v13 = vld [vmem:[%s4095_s11 + $0x28] sm:$0xff] }
 0x496   : > { %v1631_v16 = vmul.f32 %v2573_v11, %v1620_v14  ;;  %v1643_v23 = vmax.f32 %v1639_v20, 0.0  ;;  %v2052_v11 = vld [vmem:[%s4095_s11 + $0xa8] sm:$0xff]  ;;  %v2051_v14 = vld [vmem:[%s4095_s11 + $0xa0] sm:$0xff]  ;;  %v2049_v20 = vld [vmem:[%s4095_s11 + $0x90] sm:$0xff] }
 0x498   : > { %v1640_v19 = vadd.f32 %v2574_v17, %v1631_v16  ;;  %v2035_v16 = vld [vmem:[%s4095_s11 + $0x20] sm:$0xff]  ;;  %v2050_v17 = vld [vmem:[%s4095_s11 + $0x98] sm:$0xff] }
 0x49a   : > { %v1644_v21 = vmax.f32 %v1640_v19, 0.0  ;;  %v2034_v19 = vld [vmem:[%s4095_s11 + $0x18] sm:$0xff] }
 0x49c   : > { %3039 = vmatprep.subr.mxu1 %v1644_v21 }
 0x49d   : > { %3040 = vmatpush3.msra.mxu1 %v1644_v21  ;;  %v2064_v21 = vld [vmem:[%s4095_s11 + $0x108] sm:$0xff] }
 0x49e   : > { %3041 = vmatprep.subr.mxu1 %v1643_v23 }
 0x49f   : > { %3042 = vmatpush3.msra.mxu1 %v1643_v23  ;;  %v2048_v23 = vld [vmem:[%s4095_s11 + $0x88] sm:$0xff] }
 0x4a0   : > { %3043 = vmatprep.subr.mxu1 %v1642_v25 }
 0x4a1   : > { %3044 = vmatpush3.msra.mxu1 %v1642_v25  ;;  %v2032_v25 = vld [vmem:[%s4095_s11 + $0x8] sm:$0xff] }
 0x4a2   : > { %3045 = vmatprep.subr.mxu1 %v1641_v26 }
 0x4a3   : > { %3046 = vmatpush3.msra.mxu1 %v1641_v26  ;;  %v2047_v26 = vld [vmem:[%s4095_s11 + $0x80] sm:$0xff] }
 0x4a4   : > { %3048 = vmatmul.mubr.msk.f32.vlgmr.msra.gmra.mxu1 %vm1653_vm5, %v1646_v27  ;;  %2819 = vmatprep.subr.mxu1 %v2062_v36  ;;  %v2031_v27 = vld [vmem:[%s4095_s11] sm:$0xff] }
 0x4a5   : > { %3050 = vmatprep.mubr.msk.f32.mxu1 %vm1653_vm5, %v1647_v28  ;;  %2820 = vmatpush3.msra.mxu1 %v2046_v37 }
 0x4a6   : > { %2821 = vmatprep.subr.mxu1 %v2061_v38 }
 0x4a7   : > { %2822 = vmatpush3.msra.mxu1 %v2045_v39 }
 0x4a8   : > { %3051 = vmatmul.mubr.msk.f32.gmra.mxu1 %vm1653_vm5, %v1648_v29  ;;  %2823 = vmatprep.subr.mxu1 %v2060_v40 }
 0x4a9   : > { %3053 = vmatprep.mubr.msk.f32.mxu1 %vm1653_vm5, %v1649_v30  ;;  %2824 = vmatpush3.msra.mxu1 %v2044_v41 }
 0x4aa   : > { %2825 = vmatprep.subr.mxu1 %v2059_v42 }
 0x4ab   : > { %2826 = vmatpush3.msra.mxu1 %v2043_v43 }
 0x4ac   : > { %3054 = vmatmul.mubr.msk.f32.gmra.mxu1 %vm1653_vm5, %v1650_v31  ;;  %2827 = vmatprep.subr.mxu1 %v2058_v44 }
 0x4ad   : > { %3056 = vmatprep.mubr.msk.f32.mxu1 %vm1653_vm5, %v1651_v32  ;;  %2828 = vmatpush3.msra.mxu1 %v2042_v45 }
 0x4ae   : > { %2829 = vmatprep.subr.mxu1 %v2057_v46 }
 0x4af   : > { %2830 = vmatpush3.msra.mxu1 %v2041_v47 }
 0x4b0   : > { %3057 = vmatmul.mubr.msk.f32.gmra.mxu1 %vm1653_vm5, %v1652_v33  ;;  %2831 = vmatprep.subr.mxu1 %v2056_v48 }
 0x4b1   : > { %2832 = vmatpush3.msra.mxu1 %v2040_v49 }
 0x4b2   : > { %2833 = vmatprep.subr.mxu1 %v2055_v2 }
 0x4b3   : > { %2834 = vmatpush3.msra.mxu1 %v2039_v4 }
 0x4b4   : > { %2835 = vmatprep.subr.mxu1 %v2054_v5 }
 0x4b5   : > { %2836 = vmatpush3.msra.mxu1 %v2038_v7 }
 0x4b6   : > { %2837 = vmatprep.subr.mxu1 %v2053_v8 }
 0x4b7   : > { %2838 = vmatpush3.msra.mxu1 %v2037_v10 }
 0x4b8   : > { %2839 = vmatprep.subr.mxu1 %v2052_v11 }
 0x4b9   : > { %2840 = vmatpush3.msra.mxu1 %v2036_v13 }
 0x4ba   : > { %2841 = vmatprep.subr.mxu1 %v2051_v14 }
 0x4bb   : > { %2842 = vmatpush3.msra.mxu1 %v2035_v16 }
 0x4bc   : > { %2843 = vmatprep.subr.mxu1 %v2050_v17 }
 0x4bd   : > { %2844 = vmatpush3.msra.mxu1 %v2034_v19 }
 0x4be   : > { %2845 = vmatprep.subr.mxu1 %v2049_v20 }
 0x4bf   : > { %2846 = vmatpush3.msra.mxu1 %v2033_v22  ;;  %v2030_v22 = vld [vmem:[#allocation2 + $0xd0] sm:$0x1] }
 0x4c0   : > { %2847 = vmatprep.subr.mxu1 %v2048_v23 }
 0x4c1   : > { %2848 = vmatpush3.msra.mxu1 %v2032_v25 }
 0x4c2   : > { %2849 = vmatprep.subr.mxu1 %v2047_v26 }
 0x4c3   : > { %2850 = vmatpush3.msra.mxu1 %v2031_v27 }
 0x564   : > { %v3049_v50 = vpop.f32.mrf.mxu1 }
 0x566   : > { %v1744_v51 = vpop.f32.mrf.mxu1 }
 0x567   : > { %3075 = vmatprep.mubr.msk.f32.mxu0 %vm1194_vm4, %v1744_v51 }
 0x568   : > { %v3052_v53 = vpop.f32.mrf.mxu1  ;;  %3076 = vmatmul.mubr.msk.f32.vlgmr.msra.gmra.mxu0 %vm1194_vm4, %v3049_v50 }
 0x569   : > { %3088 = vmatpush3.msra.mxu0 %v2078_v0 }
 0x56a   : > { %v1754_v55 = vpop.f32.mrf.mxu1  ;;  %3089 = vmatprep.subr.mxu0 %v2077_v52 }
 0x56b   : > { %3078 = vmatprep.mubr.msk.f32.mxu0 %vm1194_vm4, %v1754_v55  ;;  %3090 = vmatpush3.msra.mxu0 %v2077_v52 }
 0x56c   : > { %v3055_v57 = vpop.f32.mrf.mxu1  ;;  %3079 = vmatmul.mubr.msk.f32.gmra.mxu0 %vm1194_vm4, %v3052_v53  ;;  %3091 = vmatprep.subr.mxu0 %v2076_v54 }
 0x56d   : > { %3092 = vmatpush3.msra.mxu0 %v2076_v54 }
 0x56e   : > { %v1764_v59 = vpop.f32.mrf.mxu1  ;;  %3093 = vmatprep.subr.mxu0 %v2075_v56 }
 0x56f   : > { %3081 = vmatprep.mubr.msk.f32.mxu0 %vm1194_vm4, %v1764_v59  ;;  %3094 = vmatpush3.msra.mxu0 %v2075_v56 }
 0x570   : > { %3082 = vmatmul.mubr.msk.f32.gmra.mxu0 %vm1194_vm4, %v3055_v57  ;;  %v3058_v61 = vpop.f32.mrf.mxu1  ;;  %3095 = vmatprep.subr.mxu0 %v2074_v58 }
 0x571   : > { %3096 = vmatpush3.msra.mxu0 %v2074_v58 }
 0x572   : > { %v1774_v63 = vpop.f32.mrf.mxu1  ;;  %3097 = vmatprep.subr.mxu0 %v2073_v60 }
 0x573   : > { %3084 = vmatprep.mubr.msk.f32.mxu0 %vm1194_vm4, %v1774_v63  ;;  %3098 = vmatpush3.msra.mxu0 %v2073_v60 }
 0x574   : > { %3085 = vmatmul.mubr.msk.f32.gmra.mxu0 %vm1194_vm4, %v3058_v61  ;;  %3099 = vmatprep.subr.mxu0 %v2072_v62 }
 0x575   : > { %3100 = vmatpush3.msra.mxu0 %v2072_v62 }
 0x576   : > { %3101 = vmatprep.subr.mxu0 %v2071_v1 }
 0x577   : > { %3102 = vmatpush3.msra.mxu0 %v2071_v1 }
 0x578   : > { %3103 = vmatprep.subr.mxu0 %v2070_v3 }
 0x579   : > { %3104 = vmatpush3.msra.mxu0 %v2070_v3 }
 0x57a   : > { %3105 = vmatprep.subr.mxu0 %v2069_v6 }
 0x57b   : > { %3106 = vmatpush3.msra.mxu0 %v2069_v6 }
 0x57c   : > { %3107 = vmatprep.subr.mxu0 %v2068_v9 }
 0x57d   : > { %3108 = vmatpush3.msra.mxu0 %v2068_v9 }
 0x57e   : > { %3109 = vmatprep.subr.mxu0 %v2067_v12 }
 0x57f   : > { %3110 = vmatpush3.msra.mxu0 %v2067_v12 }
 0x580   : > { %3111 = vmatprep.subr.mxu0 %v2066_v15 }
 0x581   : > { %3112 = vmatpush3.msra.mxu0 %v2066_v15 }
 0x582   : > { %3113 = vmatprep.subr.mxu0 %v2065_v18 }
 0x583   : > { %3114 = vmatpush3.msra.mxu0 %v2065_v18 }
 0x584   : > { %3115 = vmatprep.subr.mxu0 %v2064_v21 }
 0x585   : > { %3116 = vmatpush3.msra.mxu0 %v2064_v21 }
 0x586   : > { %3117 = vmatprep.subr.mxu0 %v2063_v24 }
 0x587   : > { %3118 = vmatpush3.msra.mxu0 %v2063_v24 }
 0x628   : > { %v3077_v28 = vpop.f32.mrf.mxu0 }
 0x629   : > { %v1929_v30 = vrot.slane %v3077_v28, 6  ;;  %v1963_v31 = vrot.slane %v3077_v28, 7  ;;  %v2113_v51 = vrot.slane %v3077_v28, 1 }
 0x62a   : > { %v1881_v29 = vpop.f32.mrf.mxu0 }
 0x62b   : > { %v1928_v32 = vrot.slane %v1881_v29, 6  ;;  %v1962_v33 = vrot.slane %v1881_v29, 7  ;;  %1995 = vst [vmem:[#allocation2 + $0x10] sm:$0xff] %v1881_v29  ;;  %v2155_v29 = vrot.slane %v2030_v22, 1 }
 0x62c   : > { %v3979_v34 = vpop.f32.mrf.mxu0 }
 0x62d   : > { %v3982_v35 = vsel %vm531_vm1, %v1928_v32, %v1929_v30  ;;  %1952 = vst [vmem:[#allocation2] sm:$0xfc] %v1928_v32  ;;  %v1964_v36 = vsel %vm542_vm0, %v1962_v33, %v1963_v31  ;;  %1986 = vst [vmem:[#allocation2 + $0x8] sm:$0xfe] %v1962_v33  ;;  %v1933_v0 = vrot.slane %v3979_v34, 6  ;;  %v1967_v37 = vrot.slane %v3979_v34, 7 }
 0x62e   : > { %v1891_v38 = vpop.f32.mrf.mxu0  ;;  %v2110_v54 = vrot.slane %v1964_v36, 1  ;;  %v2125_v61 = vrot.slane %v3979_v34, 1  ;;  %v2107_v13 = vrot.slane %v3982_v35, 1 }
 0x62f   : > { %v1931_v39 = vrot.slane %v1891_v38, 6  ;;  %v1965_v40 = vrot.slane %v1891_v38, 7  ;;  %1997 = vst [vmem:[#allocation2 + $0x40] sm:$0xff] %v1891_v38  ;;  %v2119_v42 = vrot.slane %v1891_v38, 1 }
 0x630   : > { %v3987_v41 = vpop.f32.mrf.mxu0 }
 0x631   : > { %v3990_v43 = vsel %vm531_vm1, %v1929_v30, %v1931_v39  ;;  %v3993_v44 = vsel %vm531_vm1, %v1931_v39, %v1933_v0  ;;  %v3996_v45 = vsel %vm542_vm0, %v1963_v31, %v1965_v40  ;;  %v3999_v46 = vsel %vm542_vm0, %v1965_v40, %v1967_v37 }
 0x632   : > { %1954 = vst [vmem:[#allocation2 + $0x30] sm:$0xff] %v3990_v43  ;;  %1988 = vst [vmem:[#allocation2 + $0x38] sm:$0xff] %v3996_v45  ;;  %v1937_v47 = vrot.slane %v3987_v41, 6  ;;  %v1971_v48 = vrot.slane %v3987_v41, 7  ;;  %v1901_v49 = vpop.f32.mrf.mxu0  ;;  %v2006_v50 = vld [vmem:[#allocation2 + $0x10] sm:$0xfe]  ;;  %v2120_v59 = vsel %vm621_vm2, %v2113_v51, %v2119_v42  ;;  %v2126_v14 = vsel %vm621_vm2, %v2119_v42, %v2125_v61 }
 0x633   : > { %v1935_v52 = vrot.slane %v1901_v49, 6  ;;  %v1969_v53 = vrot.slane %v1901_v49, 7  ;;  %1999 = vst [vmem:[#allocation2 + $0x70] sm:$0xff] %v1901_v49  ;;  %v2112_v55 = vrot.slane %v2006_v50, 1  ;;  %v2117_v60 = vrot.slane %v3996_v45, 1 }
 0x634   : > { %v3086_v56 = vpop.f32.mrf.mxu0  ;;  %v2005_v57 = vld [vmem:[#allocation2 + $0x8] sm:$0xfe]  ;;  %v2004_v58 = vld [vmem:[#allocation2] sm:$0xfe]  ;;  %v2131_v11 = vrot.slane %v1901_v49, 1  ;;  %v2115_v21 = vrot.slane %v3990_v43, 1 }
 0x635   : > { %v4009_v62 = vsel %vm531_vm1, %v1933_v0, %v1935_v52  ;;  %v4012_v63 = vsel %vm531_vm1, %v1935_v52, %v1937_v47  ;;  %v4015_v1 = vsel %vm542_vm0, %v1967_v37, %v1969_v53  ;;  %v4018_v2 = vsel %vm542_vm0, %v1969_v53, %v1971_v48 }
 0x636   : > { %1956 = vst [vmem:[#allocation2 + $0x60] sm:$0xff] %v4009_v62  ;;  %1990 = vst [vmem:[#allocation2 + $0x68] sm:$0xff] %v4015_v1  ;;  %v1941_v3 = vrot.slane %v3086_v56, 6  ;;  %v1975_v4 = vrot.slane %v3086_v56, 7  ;;  %v1911_v5 = vpop.f32.mrf.mxu0  ;;  %v2109_v6 = vrot.slane %v2005_v57, 1  ;;  %v2114_v7 = vsel %vm621_vm2, %v2112_v55, %v2113_v51 }
 0x637   : > { %v1939_v8 = vrot.slane %v1911_v5, 6  ;;  %v1973_v9 = vrot.slane %v1911_v5, 7  ;;  %3119 = vmatprep.mubr.f32.mxu0 %v2114_v7  ;;  %v2106_v10 = vrot.slane %v2004_v58, 1  ;;  %v2118_v20 = vsel %vm621_vm2, %v2110_v54, %v2117_v60 }
 0x638   : > { %1960 = vst [vmem:[#allocation2 + $0xc0] sm:$0x3] %v1941_v3  ;;  %1994 = vst [vmem:[#allocation2 + $0xc8] sm:$0x1] %v1975_v4  ;;  %v2111_v12 = vsel %vm621_vm2, %v2109_v6, %v2110_v54  ;;  %3120 = vmatmul.mubr.f32.vlgmr.msra.gmra.mxu0 %v2120_v59  ;;  %v2132_v23 = vsel %vm621_vm2, %v2125_v61, %v2131_v11  ;;  %v2123_v24 = vrot.slane %v3999_v46, 1  ;;  %v2137_v25 = vrot.slane %v3987_v41, 1 }
 0x639   : > { %v1940_v15 = vsel %vm531_vm1, %v1937_v47, %v1939_v8  ;;  %v4028_v16 = vsel %vm531_vm1, %v1939_v8, %v1941_v3  ;;  %v1974_v17 = vsel %vm542_vm0, %v1971_v48, %v1973_v9  ;;  %v1976_v18 = vsel %vm542_vm0, %v1973_v9, %v1975_v4  ;;  %2245 = vmatprep.mubr.f32.mxu1 %v2111_v12  ;;  %v2592_v3 = vld [vmem:[%s4096_s12 + $0x1] ss:$0 sm:$0xff] }
 0x63a   : > { %v2108_v19 = vsel %vm621_vm2, %v2106_v10, %v2107_v13  ;;  %3122 = vmatprep.mubr.f32.mxu0 %v2126_v14  ;;  %v2143_v26 = vrot.slane %v1911_v5, 1  ;;  %v2149_v27 = vrot.slane %v3086_v56, 1  ;;  %v2138_v28 = vsel %vm621_vm2, %v2131_v11, %v2137_v25 }
 0x63b   : > { %2246 = vmatmul.mubr.f32.vlgmr.msra.gmra.mxu1 %v2108_v19  ;;  %v2116_v30 = vsel %vm621_vm2, %v2107_v13, %v2115_v21  ;;  %v2121_v31 = vrot.slane %v3993_v44, 1  ;;  %v2124_v33 = vsel %vm621_vm2, %v2117_v60, %v2123_v24  ;;  %v2129_v34 = vrot.slane %v4015_v1, 1 }
 0x63c   : > { %2250 = vmatprep.mubr.f32.mxu1 %v2118_v20  ;;  %3123 = vmatmul.mubr.f32.gmra.mxu0 %v2132_v23  ;;  %v2150_v32 = vsel %vm621_vm2, %v2143_v26, %v2149_v27  ;;  %v2144_v35 = vsel %vm621_vm2, %v2137_v25, %v2143_v26  ;;  %v2156_v36 = vsel %vm621_vm2, %v2149_v27, %v2155_v29  ;;  %v2127_v37 = vrot.slane %v4009_v62, 1 }
 0x63d   : > { %3125 = vmatprep.mubr.f32.mxu0 %v2138_v28  ;;  %v2122_v0 = vsel %vm621_vm2, %v2115_v21, %v2121_v31  ;;  %v2130_v38 = vsel %vm621_vm2, %v2123_v24, %v2129_v34  ;;  %v2135_v39 = vrot.slane %v4018_v2, 1  ;;  %v2133_v41 = vrot.slane %v4012_v63, 1  ;;  %v2591_v63 = vld [vmem:[%s4096_s12] ss:$0 sm:$0xff] }
 0x63e   : > { %v2128_v40 = vsel %vm621_vm2, %v2121_v31, %v2127_v37  ;;  %v2141_v43 = vrot.slane %v1974_v17, 1  ;;  %v2139_v45 = vrot.slane %v1940_v15, 1  ;;  %v2147_v47 = vrot.slane %v1976_v18, 1 }
 0x63f   : > { %2251 = vmatmul.mubr.f32.gmra.mxu1 %v2116_v30  ;;  %v2136_v42 = vsel %vm621_vm2, %v2129_v34, %v2135_v39  ;;  %v2134_v44 = vsel %vm621_vm2, %v2127_v37, %v2133_v41  ;;  %v2029_v48 = vld [vmem:[#allocation2 + $0xc8] sm:$0x1]  ;;  %v2145_v50 = vrot.slane %v4028_v16, 1  ;;  %v2028_v53 = vld [vmem:[#allocation2 + $0xc0] sm:$0x1] }
 0x640   : > { %2255 = vmatprep.mubr.f32.mxu1 %v2124_v33  ;;  %3126 = vmatmul.mubr.f32.gmra.mxu0 %v2144_v35  ;;  %v2142_v46 = vsel %vm621_vm2, %v2135_v39, %v2141_v43  ;;  %v2140_v49 = vsel %vm621_vm2, %v2133_v41, %v2139_v45  ;;  %v2148_v51 = vsel %vm621_vm2, %v2141_v43, %v2147_v47  ;;  %v2153_v52 = vrot.slane %v2029_v48, 1 }
 0x641   : > { %3128 = vmatprep.mubr.f32.mxu0 %v2150_v32  ;;  %v2146_v54 = vsel %vm621_vm2, %v2139_v45, %v2145_v50  ;;  %v2151_v55 = vrot.slane %v2028_v53, 1 }
 0x642   : > { %v2154_v56 = vsel %vm621_vm2, %v2147_v47, %v2153_v52 }
 0x643   : > { %2256 = vmatmul.mubr.f32.gmra.mxu1 %v2122_v0  ;;  %v2152_v57 = vsel %vm621_vm2, %v2145_v50, %v2151_v55 }
 0x644   : > { %2260 = vmatprep.mubr.f32.mxu1 %v2130_v38  ;;  %3129 = vmatmul.mubr.f32.gmra.mxu0 %v2156_v36 }
 0x647   : > { %2261 = vmatmul.mubr.f32.gmra.mxu1 %v2128_v40 }
 0x648   : > { %2265 = vmatprep.mubr.f32.mxu1 %v2136_v42 }
 0x64b   : > { %2266 = vmatmul.mubr.f32.gmra.mxu1 %v2134_v44 }
 0x64c   : > { %2270 = vmatprep.mubr.f32.mxu1 %v2142_v46 }
 0x64f   : > { %2271 = vmatmul.mubr.f32.gmra.mxu1 %v2140_v49 }
 0x650   : > { %2275 = vmatprep.mubr.f32.mxu1 %v2148_v51 }
 0x653   : > { %2276 = vmatmul.mubr.f32.gmra.mxu1 %v2146_v54 }
 0x654   : > { %2280 = vmatprep.mubr.f32.mxu1 %v2154_v56 }
 0x657   : > { %2281 = vmatmul.mubr.f32.gmra.mxu1 %v2152_v57 }
 0x6f8   : > { %v3121_v59 = vpop.f32.mrf.mxu0 }
 0x6fa   : > { %v2352_v62 = vpop.f32.mrf.mxu0 }
 0x6fb   : > { %v2851_v58 = vpop.f32.mrf.mxu1 }
 0x6fc   : > { %v3124_v7 = vpop.f32.mrf.mxu0 }
 0x6fd   : > { %v2852_v60 = vpop.f32.mrf.mxu1 }
 0x6fe   : > { %v2853_v61 = vadd.f32 %v2852_v60, %v2851_v58  ;;  %v2362_v14 = vpop.f32.mrf.mxu0 }
 0x6ff   : > { %v2854_v1 = vpop.f32.mrf.mxu1 }
 0x700   : > { %v2353_v2 = vadd.f32 %v2853_v61, %v2352_v62  ;;  %v3127_v21 = vpop.f32.mrf.mxu0 }
 0x701   : > { %v2855_v4 = vpop.f32.mrf.mxu1 }
 0x702   : > { %v2396_v5 = vmul.f32 %v2591_v63, %v2353_v2  ;;  %v2856_v6 = vadd.f32 %v2855_v4, %v2854_v1  ;;  %v2372_v28 = vpop.f32.mrf.mxu0 }
 0x703   : > { %v2857_v8 = vpop.f32.mrf.mxu1 }
 0x704   : > { %v2409_v9 = vadd.f32 %v2592_v3, %v2396_v5  ;;  %v2358_v10 = vadd.f32 %v3121_v59, %v2856_v6  ;;  %v3130_v35 = vpop.f32.mrf.mxu0 }
 0x705   : > { %v2858_v11 = vpop.f32.mrf.mxu1 }
 0x706   : > { %2417 = vst [vmem:[%s4071_s21] sm:$0xff] %v2409_v9  ;;  %v2397_v12 = vmul.f32 %v2591_v63, %v2358_v10  ;;  %v2859_v13 = vadd.f32 %v2858_v11, %v2857_v8  ;;  %v2382_v41 = vpop.f32.mrf.mxu0 }
 0x707   : > { %v2860_v15 = vpop.f32.mrf.mxu1 }
 0x708   : > { %v2410_v16 = vadd.f32 %v2592_v3, %v2397_v12  ;;  %v2363_v17 = vadd.f32 %v2859_v13, %v2362_v14 }
 0x709   : > { %v2861_v18 = vpop.f32.mrf.mxu1 }
 0x70a   : > { %2418 = vst [vmem:[%s4071_s21 + $0x8] sm:$0xff] %v2410_v16  ;;  %v2398_v19 = vmul.f32 %v2591_v63, %v2363_v17  ;;  %v2862_v20 = vadd.f32 %v2861_v18, %v2860_v15 }
 0x70b   : > { %v2863_v22 = vpop.f32.mrf.mxu1 }
 0x70c   : > { %v2411_v23 = vadd.f32 %v2592_v3, %v2398_v19  ;;  %v2368_v24 = vadd.f32 %v3124_v7, %v2862_v20 }
 0x70d   : > { %v2864_v25 = vpop.f32.mrf.mxu1 }
 0x70e   : > { %2419 = vst [vmem:[%s4071_s21 + $0x10] sm:$0xff] %v2411_v23  ;;  %v2399_v26 = vmul.f32 %v2591_v63, %v2368_v24  ;;  %v2865_v27 = vadd.f32 %v2864_v25, %v2863_v22 }
 0x70f   : > { %v2866_v29 = vpop.f32.mrf.mxu1 }
 0x710   : > { %v2412_v30 = vadd.f32 %v2592_v3, %v2399_v26  ;;  %v2373_v31 = vadd.f32 %v2865_v27, %v2372_v28 }
 0x711   : > { %v2867_v32 = vpop.f32.mrf.mxu1 }
 0x712   : > { %2420 = vst [vmem:[%s4071_s21 + $0x18] sm:$0xff] %v2412_v30  ;;  %v2400_v33 = vmul.f32 %v2591_v63, %v2373_v31  ;;  %v2868_v34 = vadd.f32 %v2867_v32, %v2866_v29 }
 0x713   : > { %v2869_v36 = vpop.f32.mrf.mxu1 }
 0x714   : > { %v2413_v0 = vadd.f32 %v2592_v3, %v2400_v33  ;;  %v2378_v37 = vadd.f32 %v3127_v21, %v2868_v34 }
 0x715   : > { %v2870_v38 = vpop.f32.mrf.mxu1 }
 0x716   : > { %2421 = vst [vmem:[%s4071_s21 + $0x20] sm:$0xff] %v2413_v0  ;;  %v2401_v39 = vmul.f32 %v2591_v63, %v2378_v37  ;;  %v2871_v40 = vadd.f32 %v2870_v38, %v2869_v36 }
 0x717   : > { %v2872_v42 = vpop.f32.mrf.mxu1 }
 0x718   : > { %v2414_v43 = vadd.f32 %v2592_v3, %v2401_v39  ;;  %v2383_v44 = vadd.f32 %v2871_v40, %v2382_v41 }
 0x719   : > { %v2873_v45 = vpop.f32.mrf.mxu1 }
 0x71a   : > { %2422 = vst [vmem:[%s4071_s21 + $0x28] sm:$0xff] %v2414_v43  ;;  %v2402_v46 = vmul.f32 %v2591_v63, %v2383_v44  ;;  %v2874_v47 = vadd.f32 %v2873_v45, %v2872_v42 }
 0x71c   : > { %v2415_v48 = vadd.f32 %v2592_v3, %v2402_v46  ;;  %v2388_v49 = vadd.f32 %v3130_v35, %v2874_v47 }
 0x71e   : > { %2423 = vst [vmem:[%s4071_s21 + $0x30] sm:$0xff] %v2415_v48  ;;  %v2403_v50 = vmul.f32 %v2591_v63, %v2388_v49 }
 0x720   : > { %v2416_v51 = vadd.f32 %v2592_v3, %v2403_v50 }
 0x722   : > { %2424 = vst [vmem:[%s4071_s21 + $0x38] sm:$0xff] %v2416_v51 }
 0x723 PF: > { %s27_s25 = sadd.s32 1, %s3381_s25  }
 0x724   : > { %p24_p2 = scmp.ge.s32.totalorder %s27_s25, 4  }
 0x726   :  { %26 = sbr.rel (!%p24_p2) target bundleno = 4 (0x4), region = 127 }
 0x72b   :  { %2446 = vsyncpa [#allocation4], 1 }
 0x72c   :  { %2448 = vsyncpa [#allocation4 + $0x1], 1 }
 0x72d   :  { %2449 = vsyncpa [#allocation6], 1 }
 0x72e   :  { %2450 = vsyncpa [#allocation9], 1 }
 0x72f   :  { %2451 = vsyncpa [#allocation12], 1 }

</bundles_post_ra>
